<compile_context>
chip_gen: v5e
topology: v5e:2x2
jax: 0.10.0
libtpu: 0.0.40
codegen_flags: <defaults>
</compile_context>

<pallas_src>
import jax
import jax.numpy as jnp
from jax.experimental import pallas as pl
from jax.experimental.pallas import tpu as pltpu

D_IN = 28 * 28       # 784
D_H1 = 28 * 28       # 784
D_H2 = 10 * 10       # 100
D_H2_PAD = 128       # pad 100 -> 128 (full lane width)
D_OUT = 10
D_OUT_PAD = 128      # pad 10 -> 128 (lane-dense output stores)

NEG_BIG = -1e30      # masks padded logit columns out of the softmax
TB_MAX = 1024        # batch tile (rows per grid step)


def _round_up(v, m):
    return ((v + m - 1) // m) * m


def mlp_kernel(x_ref, w1_ref, b1_ref, w2_ref, b2_ref, w3_ref, b3_ref, o_ref):
    # x tile arrives f32 (TB, 784); cast to bf16 in-kernel (no wrapper convert).
    x = x_ref[...].astype(jnp.bfloat16)

    # fc1 + relu (f32 accumulation on the MXU)
    h1 = jnp.dot(x, w1_ref[...], preferred_element_type=jnp.float32) + b1_ref[...]
    h1 = jnp.maximum(h1, 0.0)

    # fc2 + relu (N padded 100 -> 128; padded cols are exactly 0 after relu)
    h2 = jnp.dot(h1.astype(jnp.bfloat16), w2_ref[...],
                 preferred_element_type=jnp.float32) + b2_ref[...]
    h2 = jnp.maximum(h2, 0.0)

    # fc3 (N padded 10 -> 128; padded cols get bias -1e30 -> exp() == 0)
    logits = jnp.dot(h2.astype(jnp.bfloat16), w3_ref[...],
                     preferred_element_type=jnp.float32) + b3_ref[...]

    # numerically stable softmax over classes; padded columns contribute 0.
    m = jnp.max(logits, axis=-1, keepdims=True)
    e = jnp.exp(logits - m)
    inv = pl.reciprocal(jnp.sum(e, axis=-1, keepdims=True), approx=True)
    o_ref[...] = (e * inv).astype(o_ref.dtype)


def init_params(key):
    """Deterministic synthetic init mirroring nn.Linear; weights stored as
    (in_features, out_features) so the kernel computes y = x @ W + b."""
    k1, k2, k3, k4, k5, k6 = jax.random.split(key, 6)

    def uni(k, shape, fan_in):
        bound = 1.0 / jnp.sqrt(fan_in)
        return jax.random.uniform(k, shape, jnp.float32, -bound, bound)

    w1 = uni(k1, (D_IN, D_H1), D_IN)
    b1 = uni(k2, (1, D_H1), D_IN)
    w2 = uni(k3, (D_H1, D_H2), D_H1)
    b2 = uni(k4, (1, D_H2), D_H1)
    w3 = uni(k5, (D_H2, D_OUT), D_H2)
    b3 = uni(k6, (1, D_OUT), D_H2)
    return (w1, b1, w2, b2, w3, b3)


def prepare_params(params_f32):
    """One-time prep: bf16 weights, f32 biases, zero-pad the 100/10 dims to
    128 lanes, and mask the padded logit columns' bias for the softmax."""
    w1, b1, w2, b2, w3, b3 = params_f32

    w1p = w1.astype(jnp.bfloat16)                                   # (784, 784)
    b1p = b1.astype(jnp.float32)                                    # (1, 784)

    w2p = jnp.zeros((D_H1, D_H2_PAD), jnp.bfloat16)
    w2p = w2p.at[:, :D_H2].set(w2.astype(jnp.bfloat16))             # (784, 128)
    b2p = jnp.zeros((1, D_H2_PAD), jnp.float32).at[:, :D_H2].set(b2)

    w3p = jnp.zeros((D_H2_PAD, D_OUT_PAD), jnp.bfloat16)
    w3p = w3p.at[:D_H2, :D_OUT].set(w3.astype(jnp.bfloat16))        # (128, 128)
    b3p = jnp.full((1, D_OUT_PAD), NEG_BIG, jnp.float32).at[:, :D_OUT].set(b3)

    return (w1p, b1p, w2p, b2p, w3p, b3p)


def mlp_forward(x_nchw, kernel_params):
    w1, b1, w2, b2, w3, b3 = kernel_params

    # Same as x.view(-1, 784); stays f32 -- the bf16 cast happens in-kernel.
    x = x_nchw.reshape(-1, D_IN).astype(jnp.float32)
    B = x.shape[0]

    # Batch tile: multiple of 8 sublanes, capped at TB_MAX, and sized so that
    # B > 8 gives at least 2 tiles (feeds both v7x TensorCores).
    half = _round_up(pl.cdiv(B, 2), 8)
    tb = min(TB_MAX, max(8, half))
    if tb >= 256:
        tb = min(TB_MAX, _round_up(tb, 256))   # MXU-friendly M at large tiles

    num_tiles = pl.cdiv(B, tb)
    if num_tiles > 1 and num_tiles % 2 == 1:
        num_tiles += 1                          # even tile count -> no idle v7x TC
    b_pad = num_tiles * tb
    if b_pad != B:
        x = jnp.pad(x, ((0, b_pad - B), (0, 0)))

    const = lambda i: (0, 0)   # weights/biases: resident, DMA'd once

    flops = 2 * b_pad * (D_IN * D_H1 + D_H1 * D_H2_PAD + D_H2_PAD * D_OUT_PAD)
    weight_bytes = (D_IN * D_H1 + D_H1 * D_H2_PAD + D_H2_PAD * D_OUT_PAD) * 2 \
                   + (D_H1 + D_H2_PAD + D_OUT_PAD) * 4
    bytes_accessed = b_pad * D_IN * 4 + weight_bytes + b_pad * D_OUT_PAD * 2

    out = pl.pallas_call(
        mlp_kernel,
        out_shape=jax.ShapeDtypeStruct((b_pad, D_OUT_PAD), jnp.bfloat16),
        grid=(num_tiles,),
        in_specs=[
            pl.BlockSpec((tb, D_IN), lambda i: (i, 0)),       # x tile (f32)
            pl.BlockSpec((D_IN, D_H1), const),                # w1
            pl.BlockSpec((1, D_H1), const),                   # b1
            pl.BlockSpec((D_H1, D_H2_PAD), const),            # w2
            pl.BlockSpec((1, D_H2_PAD), const),               # b2
            pl.BlockSpec((D_H2_PAD, D_OUT_PAD), const),       # w3
            pl.BlockSpec((1, D_OUT_PAD), const),              # b3
        ],
        out_specs=pl.BlockSpec((tb, D_OUT_PAD), lambda i: (i, 0)),
        compiler_params=pltpu.CompilerParams(
            dimension_semantics=("parallel",),   # shard batch tiles on v7x megacore
            vmem_limit_bytes=48 << 20,           # ~15 MiB actually used at TB=1024
        ),
        cost_estimate=pl.CostEstimate(
            flops=flops,
            transcendentals=b_pad * D_OUT_PAD,
            bytes_accessed=bytes_accessed,
        ),
    )(x, w1, b1, w2, b2, w3, b3)

    return out[:B, :D_OUT]


def mlp_reference(x_nchw, params_f32):
    """Pure-JAX f32 reference (matches the PyTorch module)."""
    w1, b1, w2, b2, w3, b3 = params_f32
    x = x_nchw.reshape(-1, D_IN).astype(jnp.float32)
    h1 = jax.nn.relu(x @ w1 + b1)
    h2 = jax.nn.relu(h1 @ w2 + b2)
    logits = h2 @ w3 + b3
    return jax.nn.softmax(logits, axis=1)


if __name__ == "__main__":
    key = jax.random.PRNGKey(0)
    kx, kp = jax.random.split(key)

    # Small MNIST-like batch: (batch=8, channels=1, 28, 28)
    x = jax.random.normal(kx, (8, 1, 28, 28), jnp.float32)
    params_f32 = init_params(kp)
    kernel_params = prepare_params(params_f32)

    out = mlp_forward(x, kernel_params)
    out = jax.block_until_ready(out)

    ref = mlp_reference(x, params_f32)
    assert out.shape == (8, 10), out.shape
    out_f32 = out.astype(jnp.float32)
    # bf16 weights/activations/output + approx reciprocal -> relaxed tolerance
    assert jnp.allclose(out_f32, ref, atol=2e-2, rtol=2e-2), "mismatch vs reference"
    assert jnp.allclose(jnp.sum(out_f32, axis=1), 1.0, atol=1e-2), \
        "softmax rows must sum to ~1"

    print("KERNEL_OK")
</pallas_src>

<mosaic_0001>
module attributes {stable_mosaic.version = 11 : i64} {
  func.func @mlp_kernel(%arg0: i32, %arg1: memref<8x784xf32, #tpu.memory_space<vmem>>, %arg2: memref<784x784xbf16, #tpu.memory_space<vmem>>, %arg3: memref<1x784xf32, #tpu.memory_space<vmem>>, %arg4: memref<784x128xbf16, #tpu.memory_space<vmem>>, %arg5: memref<1x128xf32, #tpu.memory_space<vmem>>, %arg6: memref<128x128xbf16, #tpu.memory_space<vmem>>, %arg7: memref<1x128xf32, #tpu.memory_space<vmem>>, %arg8: memref<8x128xbf16, #tpu.memory_space<vmem>>) attributes {dimension_semantics = [#tpu.dimension_semantics<parallel>], iteration_bounds = array<i64: 1>, scalar_prefetch = 0 : i64, scratch_operands = 0 : i64, tpu.core_type = #tpu.core_type<tc>, window_params = [{transform_indices = @transform_0, window_bounds = array<i64: 8, 784>}, {pipeline_mode = #tpu.pipeline_mode<synchronous>, transform_indices = @transform_1, window_bounds = array<i64: 784, 784>}, {pipeline_mode = #tpu.pipeline_mode<synchronous>, transform_indices = @transform_2, window_bounds = array<i64: 1, 784>}, {pipeline_mode = #tpu.pipeline_mode<synchronous>, transform_indices = @transform_3, window_bounds = array<i64: 784, 128>}, {pipeline_mode = #tpu.pipeline_mode<synchronous>, transform_indices = @transform_4, window_bounds = array<i64: 1, 128>}, {pipeline_mode = #tpu.pipeline_mode<synchronous>, transform_indices = @transform_5, window_bounds = array<i64: 128, 128>}, {pipeline_mode = #tpu.pipeline_mode<synchronous>, transform_indices = @transform_6, window_bounds = array<i64: 1, 128>}, {transform_indices = @transform_7, window_bounds = array<i64: 8, 128>}]} {
    %c0 = arith.constant 0 : index
    %c0_0 = arith.constant 0 : index
    %0 = vector.load %arg1[%c0, %c0_0] : memref<8x784xf32, #tpu.memory_space<vmem>>, vector<8x784xf32>
    %1 = arith.truncf %0 : vector<8x784xf32> to vector<8x784xbf16>
    %c0_1 = arith.constant 0 : index
    %c0_2 = arith.constant 0 : index
    %2 = vector.load %arg2[%c0_1, %c0_2] : memref<784x784xbf16, #tpu.memory_space<vmem>>, vector<784x784xbf16>
    %cst = arith.constant dense<0.000000e+00> : vector<8x784xf32>
    %3 = tpu.matmul %1, %2, %cst {dimension_numbers = #tpu.dot_dimension_numbers<[1], [0], [0], [1], [0, 0, 1, 1], [], []>} : vector<8x784xbf16>, vector<784x784xbf16>, vector<8x784xf32> -> vector<8x784xf32>
    %c0_3 = arith.constant 0 : index
    %c0_4 = arith.constant 0 : index
    %4 = vector.load %arg3[%c0_3, %c0_4] : memref<1x784xf32, #tpu.memory_space<vmem>>, vector<1x784xf32>
    %5 = vector.broadcast %4 : vector<1x784xf32> to vector<8x784xf32>
    %6 = arith.addf %3, %5 : vector<8x784xf32>
    %cst_5 = arith.constant 0.000000e+00 : f32
    %7 = vector.broadcast %cst_5 : f32 to vector<8x784xf32>
    %8 = arith.maximumf %6, %7 : vector<8x784xf32>
    %9 = arith.truncf %8 : vector<8x784xf32> to vector<8x784xbf16>
    %c0_6 = arith.constant 0 : index
    %c0_7 = arith.constant 0 : index
    %10 = vector.load %arg4[%c0_6, %c0_7] : memref<784x128xbf16, #tpu.memory_space<vmem>>, vector<784x128xbf16>
    %cst_8 = arith.constant dense<0.000000e+00> : vector<8x128xf32>
    %11 = tpu.matmul %9, %10, %cst_8 {dimension_numbers = #tpu.dot_dimension_numbers<[1], [0], [0], [1], [0, 0, 1, 1], [], []>} : vector<8x784xbf16>, vector<784x128xbf16>, vector<8x128xf32> -> vector<8x128xf32>
    %c0_9 = arith.constant 0 : index
    %c0_10 = arith.constant 0 : index
    %12 = vector.load %arg5[%c0_9, %c0_10] : memref<1x128xf32, #tpu.memory_space<vmem>>, vector<1x128xf32>
    %13 = vector.broadcast %12 : vector<1x128xf32> to vector<8x128xf32>
    %14 = arith.addf %11, %13 : vector<8x128xf32>
    %cst_11 = arith.constant 0.000000e+00 : f32
    %15 = vector.broadcast %cst_11 : f32 to vector<8x128xf32>
    %16 = arith.maximumf %14, %15 : vector<8x128xf32>
    %17 = arith.truncf %16 : vector<8x128xf32> to vector<8x128xbf16>
    %c0_12 = arith.constant 0 : index
    %c0_13 = arith.constant 0 : index
    %18 = vector.load %arg6[%c0_12, %c0_13] : memref<128x128xbf16, #tpu.memory_space<vmem>>, vector<128x128xbf16>
    %cst_14 = arith.constant dense<0.000000e+00> : vector<8x128xf32>
    %19 = tpu.matmul %17, %18, %cst_14 {dimension_numbers = #tpu.dot_dimension_numbers<[1], [0], [0], [1], [0, 0, 1, 1], [], []>} : vector<8x128xbf16>, vector<128x128xbf16>, vector<8x128xf32> -> vector<8x128xf32>
    %c0_15 = arith.constant 0 : index
    %c0_16 = arith.constant 0 : index
    %20 = vector.load %arg7[%c0_15, %c0_16] : memref<1x128xf32, #tpu.memory_space<vmem>>, vector<1x128xf32>
    %21 = vector.broadcast %20 : vector<1x128xf32> to vector<8x128xf32>
    %22 = arith.addf %19, %21 : vector<8x128xf32>
    %cst_17 = arith.constant dense<0xFF800000> : vector<8xf32>
    %23 = vector.multi_reduction <maximumf>, %22, %cst_17 [1] : vector<8x128xf32> to vector<8xf32>
    %24 = vector.shape_cast %23 : vector<8xf32> to vector<8x1xf32>
    %25 = vector.broadcast %24 : vector<8x1xf32> to vector<8x128xf32>
    %26 = arith.subf %22, %25 : vector<8x128xf32>
    %27 = math.exp %26 : vector<8x128xf32>
    %cst_18 = arith.constant dense<0.000000e+00> : vector<8xf32>
    %28 = vector.multi_reduction <add>, %27, %cst_18 [1] : vector<8x128xf32> to vector<8xf32>
    %29 = vector.shape_cast %28 : vector<8xf32> to vector<8x1xf32>
    %30 = tpu.reciprocal %29 {approx = true} : vector<8x1xf32> -> vector<8x1xf32>
    %31 = vector.broadcast %30 : vector<8x1xf32> to vector<8x128xf32>
    %32 = arith.mulf %27, %31 : vector<8x128xf32>
    %33 = arith.truncf %32 : vector<8x128xf32> to vector<8x128xbf16>
    %c0_19 = arith.constant 0 : index
    %c0_20 = arith.constant 0 : index
    %34 = vector.load %arg8[%c0_19, %c0_20] : memref<8x128xbf16, #tpu.memory_space<vmem>>, vector<8x128xbf16>
    tpu.vector_store %arg8[%c0_19, %c0_20], %33 {strides = array<i32>} : memref<8x128xbf16, #tpu.memory_space<vmem>>, vector<8x128xbf16>,
    return
  }
  func.func @transform_0(%arg0: i32) -> (i32, i32) {
    %c0_i32 = arith.constant 0 : i32
    %c0_i32_0 = arith.constant 0 : i32
    return %arg0, %c0_i32 : i32, i32
  }
  func.func @transform_1(%arg0: i32) -> (i32, i32) {
    %c0_i32 = arith.constant 0 : i32
    %c0_i32_0 = arith.constant 0 : i32
    %c0_i32_1 = arith.constant 0 : i32
    return %c0_i32, %c0_i32_0 : i32, i32
  }
  func.func @transform_2(%arg0: i32) -> (i32, i32) {
    %c0_i32 = arith.constant 0 : i32
    %c0_i32_0 = arith.constant 0 : i32
    %c0_i32_1 = arith.constant 0 : i32
    return %c0_i32, %c0_i32_0 : i32, i32
  }
  func.func @transform_3(%arg0: i32) -> (i32, i32) {
    %c0_i32 = arith.constant 0 : i32
    %c0_i32_0 = arith.constant 0 : i32
    %c0_i32_1 = arith.constant 0 : i32
    return %c0_i32, %c0_i32_0 : i32, i32
  }
  func.func @transform_4(%arg0: i32) -> (i32, i32) {
    %c0_i32 = arith.constant 0 : i32
    %c0_i32_0 = arith.constant 0 : i32
    %c0_i32_1 = arith.constant 0 : i32
    return %c0_i32, %c0_i32_0 : i32, i32
  }
  func.func @transform_5(%arg0: i32) -> (i32, i32) {
    %c0_i32 = arith.constant 0 : i32
    %c0_i32_0 = arith.constant 0 : i32
    %c0_i32_1 = arith.constant 0 : i32
    return %c0_i32, %c0_i32_0 : i32, i32
  }
  func.func @transform_6(%arg0: i32) -> (i32, i32) {
    %c0_i32 = arith.constant 0 : i32
    %c0_i32_0 = arith.constant 0 : i32
    %c0_i32_1 = arith.constant 0 : i32
    return %c0_i32, %c0_i32_0 : i32, i32
  }
  func.func @transform_7(%arg0: i32) -> (i32, i32) {
    %c0_i32 = arith.constant 0 : i32
    %c0_i32_0 = arith.constant 0 : i32
    return %arg0, %c0_i32 : i32, i32
  }
}

</mosaic_0001>

<bundles_post_ra>
// kernel: tpu_custom_call.1
= control target key start
LH: loop header
LB: loop body
LE: loop exit
PB: predicated region body
PF: predicated region fallthrough
CT: control target
= control target key end

     0   :  { %12 = vsyncpa [#allocation3], 0  ;;  %s6003_s0 = inlined_call_operand.hbm [shape: f32[8,784], index: 0, kind: input, shape index: {}]   ;;  %s6004_s1 = inlined_call_operand.hbm [shape: bf16[784,784], index: 1, kind: input, shape index: {}]   ;;  %s6005_s2 = inlined_call_operand.hbm [shape: f32[1,784], index: 2, kind: input, shape index: {}]   ;;  %s6006_s3 = inlined_call_operand.hbm [shape: bf16[784,128], index: 3, kind: input, shape index: {}]   ;;  %s6007_s4 = inlined_call_operand.hbm [shape: f32[1,128], index: 4, kind: input, shape index: {}]   ;;  %s6008_s5 = inlined_call_operand.hbm [shape: bf16[128,128], index: 5, kind: input, shape index: {}]   ;;  %s6009_s6 = inlined_call_operand.hbm [shape: f32[1,128], index: 6, kind: input, shape index: {}]   ;;  %s6010_s7 = inlined_call_operand.hbm [shape: bf16[8,128], index: 7, kind: output, shape index: {}]  }
   0x1   :  { %13 = vsyncpa [#allocation6], 0 }
   0x2   :  { %14 = vsyncpa [#allocation9], 0 }
   0x3   :  { %15 = vsyncpa [#allocation12], 0  ;;  %s32_s26 = sshll.u32 %s6004_s1, 4  ;;  %s33_s26 = int_to_ptr.hbm [resolvable:$true] %s32_s26 }
   0x4   :  { %16 = vsyncpa [#allocation4], 0  ;;  %s5803_s27 = smov [#allocation5]   ;;  %s56_s8 = sshll.u32 %s6006_s3, 4  ;;  %s57_s8 = int_to_ptr.hbm [resolvable:$true] %s56_s8 }
   0x5   :  { %s34_s28 = sshll.u32 %s5803_s27, 4  ;;  %s5804_s9 = smov 448   ;;  %s35_s28 = int_to_ptr.vmem [resolvable:$true] %s34_s28 }
   0x6   :  { %s5805_s10 = smov 28   ;;  %s5806_s11 = smov [#allocation8]  }
   0x7   :  { %40 = dma.hbm_to_vmem [thread:$0]  %s33_s26, 43904, %s35_s28, [#allocation6], %s5804_s9, %s5804_s9, %s5805_s10  }
   0x8   :  { %s58_s12 = sshll.u32 %s5806_s11, 4  ;;  %s5807_s13 = smov 64   ;;  %s59_s12 = int_to_ptr.vmem [resolvable:$true] %s58_s12 }
   0x9   :  { %s5808_s14 = smov 4   ;;  %s80_s16 = sshll.u32 %s6008_s5, 4  ;;  %s81_s16 = int_to_ptr.hbm [resolvable:$true] %s80_s16 }
   0xa   :  { %64 = dma.hbm_to_vmem [thread:$0]  %s57_s8, 6272, %s59_s12, [#allocation9], %s5807_s13, %s5807_s13, %s5808_s14  }
   0xb   :  { %s5809_s17 = smov [#allocation11]   ;;  %s22_s20 = sshll.u32 %s6003_s0, 4  ;;  %s23_s20 = int_to_ptr.hbm [resolvable:$true] %s22_s20 }
   0xc   :  { %s82_s18 = sshll.u32 %s5809_s17, 4  ;;  %s5810_s21 = smov [#allocation2]   ;;  %s83_s18 = int_to_ptr.vmem [resolvable:$true] %s82_s18 }
   0xd   :  { %88 = dma.hbm_to_vmem [thread:$0]  %s81_s16, 1024, %s83_s18, [#allocation12], %s5807_s13, %s5807_s13, %s5808_s14  }
   0xe   :  { %s24_s22 = sshll.u32 %s5810_s21, 4  ;;  %s46_s25 = sshll.u32 %s6005_s2, 4  ;;  %s25_s22 = int_to_ptr.vmem [resolvable:$true] %s24_s22  ;;  %s47_s25 = int_to_ptr.hbm [resolvable:$true] %s46_s25 }
   0xf   :  { %27 = dma.hbm_to_vmem [thread:$0]  %s23_s20, 896, %s25_s22, [#allocation3]  }
  0x10   :  { %s70_s27 = sshll.u32 %s6007_s4, 4  ;;  %s5811_s28 = smov [#allocation7]   ;;  %s71_s27 = int_to_ptr.hbm [resolvable:$true] %s70_s27 }
  0x11   :  { %s48_s29 = sshll.u32 %s5811_s28, 4  ;;  %s5812_s0 = smov [#allocation10]   ;;  %s49_s29 = int_to_ptr.vmem [resolvable:$true] %s48_s29 }
  0x12   :  { %51 = dma.hbm_to_vmem [thread:$0]  %s47_s25, 112, %s49_s29, [#allocation6]  }
  0x13   :  { %s72_s30 = sshll.u32 %s5812_s0, 4  ;;  %s94_s10 = sshll.u32 %s6009_s6, 4  ;;  %s73_s30 = int_to_ptr.vmem [resolvable:$true] %s72_s30  ;;  %s95_s10 = int_to_ptr.hbm [resolvable:$true] %s94_s10 }
  0x14   :  { %75 = dma.hbm_to_vmem [thread:$0]  %s71_s27, 16, %s73_s30, [#allocation9]  }
  0x15   :  { %s5813_s2 = smov [#allocation13]  }
  0x16   :  { %s96_s11 = sshll.u32 %s5813_s2, 4  ;;  %s97_s11 = int_to_ptr.vmem [resolvable:$true] %s96_s11 }
  0x17   :  { %99 = dma.hbm_to_vmem [thread:$0]  %s95_s10, 16, %s97_s11, [#allocation12]  }
  0x18   :  { %5793 = dma.done.wait [#allocation3], 896  }
  0x19   :  { %5794 = vsyncadd [#allocation3], 4294966400 }
  0x1a   :  { %5795 = dma.done.wait [#allocation6], 44016  }
  0x1b   :  { %5796 = vsyncadd [#allocation6], 4294923280 }
  0x1c   :  { %5797 = dma.done.wait [#allocation9], 6288  }
  0x1d   :  { %5798 = vsyncadd [#allocation9], 4294961008 }
  0x1e   :  { %5799 = dma.done.wait [#allocation12], 1040  }
  0x1f   :  { %5800 = vsyncadd [#allocation12], 4294966256  ;;  %v3772_v0 = vld [vmem:[#allocation5 + $0x188] sm:$0xf]  ;;  %v5234_v1 = vld [vmem:[#allocation5 + $0x1a0] sm:$0xf0] }
  0x20   :  { %v3996_v2 = vld [vmem:[#allocation5 + $0x348] sm:$0xf]  ;;  %v3773_v3 = vor.u32 %v5234_v1, %v3772_v0  ;;  %v5290_v4 = vld [vmem:[#allocation5 + $0x360] sm:$0xf0]  ;;  %v3744_v11 = vld [vmem:[#allocation5 + $0x150] sm:$0xf] }
  0x21   :  { %v4220_v5 = vld [vmem:[#allocation5 + $0x508] sm:$0xf]  ;;  %v5346_v6 = vld [vmem:[#allocation5 + $0x520] sm:$0xf0]  ;;  %v3997_v7 = vor.u32 %v5290_v4, %v3996_v2  ;;  %v5227_v13 = vld [vmem:[#allocation5 + $0x168] sm:$0xf0] }
  0x22   :  { %v4221_v8 = vor.u32 %v5346_v6, %v4220_v5  ;;  %v4444_v9 = vld [vmem:[#allocation5 + $0x6c8] sm:$0xf]  ;;  %v5402_v10 = vld [vmem:[#allocation5 + $0x6e0] sm:$0xf0]  ;;  %2319 = vmatpush.bf16.msra.mxu0 %v3773_v3  ;;  %v3968_v14 = vld [vmem:[#allocation5 + $0x310] sm:$0xf]  ;;  %v3745_v16 = vor.u32 %v5227_v13, %v3744_v11 }
  0x23   :  { %v4445_v12 = vor.u32 %v5402_v10, %v4444_v9  ;;  %v5283_v15 = vld [vmem:[#allocation5 + $0x328] sm:$0xf0]  ;;  %2332 = vmatpush.bf16.msra.mxu1 %v3997_v7  ;;  %v4192_v18 = vld [vmem:[#allocation5 + $0x4d0] sm:$0xf]  ;;  %v3716_v23 = vld [vmem:[#allocation5 + $0x118] sm:$0xf] }
  0x24   :  { %2345 = vmatpush.bf16.msra.mxu2 %v4221_v8  ;;  %v3969_v17 = vor.u32 %v5283_v15, %v3968_v14  ;;  %v5339_v19 = vld [vmem:[#allocation5 + $0x4e8] sm:$0xf0]  ;;  %v4416_v20 = vld [vmem:[#allocation5 + $0x690] sm:$0xf]  ;;  %v5220_v24 = vld [vmem:[#allocation5 + $0x130] sm:$0xf0] }
  0x25   :  { %2358 = vmatpush.bf16.msra.mxu3 %v4445_v12  ;;  %v4193_v21 = vor.u32 %v5339_v19, %v4192_v18  ;;  %v5395_v22 = vld [vmem:[#allocation5 + $0x6a8] sm:$0xf0]  ;;  %v3940_v26 = vld [vmem:[#allocation5 + $0x2d8] sm:$0xf]  ;;  %v5276_v27 = vld [vmem:[#allocation5 + $0x2f0] sm:$0xf0]  ;;  %v3717_v29 = vor.u32 %v5220_v24, %v3716_v23 }
  0x26   :  { %v4417_v25 = vor.u32 %v5395_v22, %v4416_v20  ;;  %v4164_v28 = vld [vmem:[#allocation5 + $0x498] sm:$0xf]  ;;  %2320 = vmatpush.bf16.msra.mxu0 %v3745_v16  ;;  %v5332_v30 = vld [vmem:[#allocation5 + $0x4b0] sm:$0xf0]  ;;  %v3941_v33 = vor.u32 %v5276_v27, %v3940_v26  ;;  %v3688_v35 = vld [vmem:[#allocation5 + $0xe0] sm:$0xf] }
  0x27   :  { %v4388_v31 = vld [vmem:[#allocation5 + $0x658] sm:$0xf]  ;;  %v5388_v32 = vld [vmem:[#allocation5 + $0x670] sm:$0xf0]  ;;  %2333 = vmatpush.bf16.msra.mxu1 %v3969_v17  ;;  %v4165_v34 = vor.u32 %v5332_v30, %v4164_v28  ;;  %v5213_v36 = vld [vmem:[#allocation5 + $0xf8] sm:$0xf0] }
  0x28   :  { %2346 = vmatpush.bf16.msra.mxu2 %v4193_v21  ;;  %v3912_v37 = vld [vmem:[#allocation5 + $0x2a0] sm:$0xf]  ;;  %v4389_v38 = vor.u32 %v5388_v32, %v4388_v31  ;;  %v5269_v39 = vld [vmem:[#allocation5 + $0x2b8] sm:$0xf0]  ;;  %v3689_v44 = vor.u32 %v5213_v36, %v3688_v35  ;;  %v3660_v47 = vld [vmem:[#allocation5 + $0xa8] sm:$0xf] }
  0x29   :  { %2359 = vmatpush.bf16.msra.mxu3 %v4417_v25  ;;  %v4136_v40 = vld [vmem:[#allocation5 + $0x460] sm:$0xf]  ;;  %v5325_v41 = vld [vmem:[#allocation5 + $0x478] sm:$0xf0]  ;;  %v3913_v45 = vor.u32 %v5269_v39, %v3912_v37  ;;  %v5206_v48 = vld [vmem:[#allocation5 + $0xc0] sm:$0xf0] }
  0x2a   :  { %v4360_v42 = vld [vmem:[#allocation5 + $0x620] sm:$0xf]  ;;  %v5381_v43 = vld [vmem:[#allocation5 + $0x638] sm:$0xf0]  ;;  %2321 = vmatpush.bf16.msra.mxu0 %v3717_v29  ;;  %v4137_v46 = vor.u32 %v5325_v41, %v4136_v40  ;;  %v3884_v49 = vld [vmem:[#allocation5 + $0x268] sm:$0xf]  ;;  %v3661_v56 = vor.u32 %v5206_v48, %v3660_v47 }
  0x2b   :  { %2334 = vmatpush.bf16.msra.mxu1 %v3941_v33  ;;  %v4361_v50 = vor.u32 %v5381_v43, %v4360_v42  ;;  %v5262_v51 = vld [vmem:[#allocation5 + $0x280] sm:$0xf0]  ;;  %v4108_v52 = vld [vmem:[#allocation5 + $0x428] sm:$0xf]  ;;  %v3632_v59 = vld [vmem:[#allocation5 + $0x70] sm:$0xf] }
  0x2c   :  { %2347 = vmatpush.bf16.msra.mxu2 %v4165_v34  ;;  %v5318_v53 = vld [vmem:[#allocation5 + $0x440] sm:$0xf0]  ;;  %v4332_v54 = vld [vmem:[#allocation5 + $0x5e8] sm:$0xf]  ;;  %v3885_v57 = vor.u32 %v5262_v51, %v3884_v49  ;;  %v5199_v60 = vld [vmem:[#allocation5 + $0x88] sm:$0xf0] }
  0x2d   :  { %2360 = vmatpush.bf16.msra.mxu3 %v4389_v38  ;;  %v5374_v55 = vld [vmem:[#allocation5 + $0x600] sm:$0xf0]  ;;  %v4109_v58 = vor.u32 %v5318_v53, %v4108_v52  ;;  %v3856_v61 = vld [vmem:[#allocation5 + $0x230] sm:$0xf]  ;;  %v5255_v63 = vld [vmem:[#allocation5 + $0x248] sm:$0xf0]  ;;  %v3633_v4 = vor.u32 %v5199_v60, %v3632_v59 }
  0x2e   :  { %2322 = vmatpush.bf16.msra.mxu0 %v3689_v44  ;;  %v4333_v62 = vor.u32 %v5374_v55, %v4332_v54  ;;  %v4080_v0 = vld [vmem:[#allocation5 + $0x3f0] sm:$0xf]  ;;  %v5311_v1 = vld [vmem:[#allocation5 + $0x408] sm:$0xf0]  ;;  %v3857_v5 = vor.u32 %v5255_v63, %v3856_v61  ;;  %v3604_v7 = vld [vmem:[#allocation5 + $0x38] sm:$0xf] }
  0x2f   :  { %2335 = vmatpush.bf16.msra.mxu1 %v3913_v45  ;;  %v4304_v2 = vld [vmem:[#allocation5 + $0x5b0] sm:$0xf]  ;;  %v5367_v3 = vld [vmem:[#allocation5 + $0x5c8] sm:$0xf0]  ;;  %v4081_v6 = vor.u32 %v5311_v1, %v4080_v0  ;;  %v5192_v8 = vld [vmem:[#allocation5 + $0x50] sm:$0xf0] }
  0x30   :  { %2348 = vmatpush.bf16.msra.mxu2 %v4137_v46  ;;  %v3828_v9 = vld [vmem:[#allocation5 + $0x1f8] sm:$0xf]  ;;  %v4305_v10 = vor.u32 %v5367_v3, %v4304_v2  ;;  %v5248_v11 = vld [vmem:[#allocation5 + $0x210] sm:$0xf0]  ;;  %v3605_v16 = vor.u32 %v5192_v8, %v3604_v7  ;;  %v3576_v17 = vld [vmem:[#allocation5] sm:$0xf] }
  0x31   :  { %2361 = vmatpush.bf16.msra.mxu3 %v4361_v50  ;;  %v4052_v12 = vld [vmem:[#allocation5 + $0x3b8] sm:$0xf]  ;;  %v5304_v13 = vld [vmem:[#allocation5 + $0x3d0] sm:$0xf0]  ;;  %v5185_v18 = vld [vmem:[#allocation5 + $0x18] sm:$0xf0]  ;;  %v3829_v19 = vor.u32 %v5248_v11, %v3828_v9 }
  0x32   :  { %2323 = vmatpush.bf16.msra.mxu0 %v3661_v56  ;;  %v4276_v14 = vld [vmem:[#allocation5 + $0x578] sm:$0xf]  ;;  %v5360_v15 = vld [vmem:[#allocation5 + $0x590] sm:$0xf0]  ;;  %v4053_v20 = vor.u32 %v5304_v13, %v4052_v12  ;;  %v3800_v21 = vld [vmem:[#allocation5 + $0x1c0] sm:$0xf]  ;;  %v3577_v31 = vor.u32 %v5185_v18, %v3576_v17 }
  0x33   :  { %2336 = vmatpush.bf16.msra.mxu1 %v3885_v57  ;;  %v5241_v22 = vld [vmem:[#allocation5 + $0x1d8] sm:$0xf0]  ;;  %v4024_v23 = vld [vmem:[#allocation5 + $0x380] sm:$0xf]  ;;  %v4277_v24 = vor.u32 %v5360_v15, %v4276_v14  ;;  %v4668_v28 = vld [vmem:[#allocation5 + $0x888] sm:$0xf] }
  0x34   :  { %2349 = vmatpush.bf16.msra.mxu2 %v4109_v58  ;;  %v5297_v25 = vld [vmem:[#allocation5 + $0x398] sm:$0xf0]  ;;  %v4248_v26 = vld [vmem:[#allocation5 + $0x540] sm:$0xf]  ;;  %v5458_v29 = vld [vmem:[#allocation5 + $0x8a0] sm:$0xf0]  ;;  %v3801_v35 = vor.u32 %v5241_v22, %v3800_v21 }
  0x35   :  { %2362 = vmatpush.bf16.msra.mxu3 %v4333_v62  ;;  %v5353_v27 = vld [vmem:[#allocation5 + $0x558] sm:$0xf0]  ;;  %v4892_v30 = vld [vmem:[#allocation5 + $0xa48] sm:$0xf]  ;;  %v5514_v32 = vld [vmem:[#allocation5 + $0xa60] sm:$0xf0]  ;;  %v4025_v36 = vor.u32 %v5297_v25, %v4024_v23  ;;  %v4669_v40 = vor.u32 %v5458_v29, %v4668_v28 }
  0x36   :  { %2324 = vmatpush.bf16.msra.mxu0 %v3633_v4  ;;  %v5231_v33 = vld [vmem:[#allocation5 + $0x18c] sm:$0xf]  ;;  %v3774_v34 = vld [vmem:[#allocation5 + $0x1a4] sm:$0xf0]  ;;  %v4920_v37 = vld [vmem:[#allocation5 + $0xa80] sm:$0xf]  ;;  %v4249_v39 = vor.u32 %v5353_v27, %v4248_v26  ;;  %v4893_v44 = vor.u32 %v5514_v32, %v4892_v30 }
  0x37   :  { %2337 = vmatpush.bf16.msra.mxu1 %v3857_v5  ;;  %v5521_v38 = vld [vmem:[#allocation5 + $0xa98] sm:$0xf0]  ;;  %v5287_v42 = vld [vmem:[#allocation5 + $0x34c] sm:$0xf]  ;;  %v3998_v43 = vld [vmem:[#allocation5 + $0x364] sm:$0xf0]  ;;  %v3777_v45 = vor.u32 %v5231_v33, %v3774_v34 }
  0x38   :  { %2350 = vmatpush.bf16.msra.mxu2 %v4081_v6  ;;  %v131_v41 = vld [vmem:[#allocation2 + $0x10] sm:$0xff]  ;;  %v4640_v46 = vld [vmem:[#allocation5 + $0x850] sm:$0xf]  ;;  %v5451_v47 = vld [vmem:[#allocation5 + $0x868] sm:$0xf0]  ;;  %v4921_v49 = vor.u32 %v5521_v38, %v4920_v37  ;;  %v4001_v54 = vor.u32 %v5287_v42, %v3998_v43  ;;  %vm2315_vm0 = vcmask 130048  }
  0x39   :  { %2363 = vmatpush.bf16.msra.mxu3 %v4305_v10  ;;  %v4864_v48 = vld [vmem:[#allocation5 + $0xa10] sm:$0xf]  ;;  %v5507_v50 = vld [vmem:[#allocation5 + $0xa28] sm:$0xf0]  ;;  %v5224_v51 = vld [vmem:[#allocation5 + $0x154] sm:$0xf]  ;;  %v5876_v53 = vpack.c.bf16 %v131_v41, %v131_v41  ;;  %v4641_v55 = vor.u32 %v5451_v47, %v4640_v46 }
  0x3a   :  { %2325 = vmatpush.bf16.msra.mxu0 %v3605_v16  ;;  %v3746_v52 = vld [vmem:[#allocation5 + $0x16c] sm:$0xf0]  ;;  %v5280_v56 = vld [vmem:[#allocation5 + $0x314] sm:$0xf]  ;;  %v4612_v58 = vld [vmem:[#allocation5 + $0x818] sm:$0xf]  ;;  %v4865_v59 = vor.u32 %v5507_v50, %v4864_v48 }
  0x3b   :  { %2338 = vmatpush.bf16.msra.mxu1 %v3829_v19  ;;  %v3970_v57 = vld [vmem:[#allocation5 + $0x32c] sm:$0xf0]  ;;  %v3749_v60 = vor.u32 %v5224_v51, %v3746_v52  ;;  %v5444_v61 = vld [vmem:[#allocation5 + $0x830] sm:$0xf0]  ;;  %v4836_v62 = vld [vmem:[#allocation5 + $0x9d8] sm:$0xf] }
  0x3c   :  { %2351 = vmatpush.bf16.msra.mxu2 %v4053_v20  ;;  %v5500_v63 = vld [vmem:[#allocation5 + $0x9f0] sm:$0xf0]  ;;  %v5217_v0 = vld [vmem:[#allocation5 + $0x11c] sm:$0xf]  ;;  %v3718_v1 = vld [vmem:[#allocation5 + $0x134] sm:$0xf0]  ;;  %v3973_v5 = vor.u32 %v5280_v56, %v3970_v57  ;;  %v4613_v6 = vor.u32 %v5444_v61, %v4612_v58 }
  0x3d   :  { %2364 = vmatpush.bf16.msra.mxu3 %v4277_v24  ;;  %v129_v2 = vld [vmem:[#allocation2] sm:$0xff]  ;;  %v5273_v3 = vld [vmem:[#allocation5 + $0x2dc] sm:$0xf]  ;;  %v3942_v7 = vld [vmem:[#allocation5 + $0x2f4] sm:$0xf0]  ;;  %v4837_v10 = vor.u32 %v5500_v63, %v4836_v62  ;;  %v3721_v11 = vor.u32 %v5217_v0, %v3718_v1  ;;  %s5814_s4 = smov [#allocation14]  }
  0x3e   :  { %2326 = vmatpush.bf16.msra.mxu0 %v3577_v31  ;;  %v5879_v4 = vpack.c.bf16 %v129_v2, %v129_v2  ;;  %v4584_v8 = vld [vmem:[#allocation5 + $0x7e0] sm:$0xf]  ;;  %v5437_v9 = vld [vmem:[#allocation5 + $0x7f8] sm:$0xf0]  ;;  %v130_v13 = vld [vmem:[#allocation2 + $0x8] sm:$0xff]  ;;  %v3945_v20 = vor.u32 %v5273_v3, %v3942_v7  ;;  %s3559_s6 = sshll.u32 %s5814_s4, 4  ;;  %s3560_s6 = int_to_ptr.vmem [resolvable:$true] %s3559_s6 }
  0x3f   :  { %2339 = vmatpush.bf16.msra.mxu1 %v3801_v35  ;;  %v4808_v12 = vld [vmem:[#allocation5 + $0x9a0] sm:$0xf]  ;;  %v5493_v15 = vld [vmem:[#allocation5 + $0x9b8] sm:$0xf0]  ;;  %v5210_v16 = vld [vmem:[#allocation5 + $0xe4] sm:$0xf]  ;;  %v5882_v18 = vpack.c.bf16 %v130_v13, %v130_v13  ;;  %v4585_v21 = vor.u32 %v5437_v9, %v4584_v8 }
  0x40   :  { %2352 = vmatpush.bf16.msra.mxu2 %v4025_v36  ;;  %v132_v14 = vld [vmem:[#allocation2 + $0x18] sm:$0xff]  ;;  %v4809_v24 = vor.u32 %v5493_v15, %v4808_v12  ;;  %v4556_v26 = vld [vmem:[#allocation5 + $0x7a8] sm:$0xf]  ;;  %v5203_v30 = vld [vmem:[#allocation5 + $0xac] sm:$0xf]  ;;  %s3561_s14 = sshll.u32 %s6010_s7, 4  ;;  %s3562_s14 = int_to_ptr.hbm [resolvable:$true] %s3561_s14 }
  0x41   :  { %2365 = vmatpush.bf16.msra.mxu3 %v4249_v39  ;;  %v3690_v17 = vld [vmem:[#allocation5 + $0xfc] sm:$0xf0]  ;;  %2327 = vmatmul.bf16.vlgmr.msra.gmra.mxu0 %v5879_v4  ;;  %v5884_v19 = vpack.c.bf16 %v132_v14, %v132_v14  ;;  %v5266_v22 = vld [vmem:[#allocation5 + $0x2a4] sm:$0xf]  ;;  %v4780_v28 = vld [vmem:[#allocation5 + $0x968] sm:$0xf] }
  0x42   :  { %2371 = vmatpush.bf16.msrb.mxu0 %v4669_v40  ;;  %v3914_v23 = vld [vmem:[#allocation5 + $0x2bc] sm:$0xf0]  ;;  %v3693_v25 = vor.u32 %v5210_v16, %v3690_v17  ;;  %v5430_v27 = vld [vmem:[#allocation5 + $0x7c0] sm:$0xf0]  ;;  %v3662_v31 = vld [vmem:[#allocation5 + $0xc4] sm:$0xf0]  ;;  %2340 = vmatmul.bf16.vlgmr.msra.gmra.mxu1 %v5882_v18 }
  0x43   :  { %2384 = vmatpush.bf16.msrb.mxu1 %v4893_v44  ;;  %2353 = vmatmul.bf16.vlgmr.msra.gmra.mxu2 %v5876_v53  ;;  %v5486_v29 = vld [vmem:[#allocation5 + $0x980] sm:$0xf0]  ;;  %v3917_v32 = vor.u32 %v5266_v22, %v3914_v23  ;;  %v4557_v33 = vor.u32 %v5430_v27, %v4556_v26  ;;  %v5259_v34 = vld [vmem:[#allocation5 + $0x26c] sm:$0xf]  ;;  %v3886_v35 = vld [vmem:[#allocation5 + $0x284] sm:$0xf0]  ;;  %v3665_v38 = vor.u32 %v5203_v30, %v3662_v31 }
  0x44   :  { %2404 = vmatpush.bf16.msrb.mxu2 %v4921_v49  ;;  %2366 = vmatmul.bf16.vlgmr.msra.gmra.mxu3 %v5884_v19  ;;  %v4528_v36 = vld [vmem:[#allocation5 + $0x770] sm:$0xf]  ;;  %v4781_v37 = vor.u32 %v5486_v29, %v4780_v28  ;;  %v5423_v39 = vld [vmem:[#allocation5 + $0x788] sm:$0xf0]  ;;  %v135_v41 = vld [vmem:[#allocation2 + $0x30] sm:$0xff]  ;;  %v3889_v46 = vor.u32 %v5259_v34, %v3886_v35 }
  0x45   :  { %2410 = vmatpush.bf16.msrb.mxu3 %v3777_v45  ;;  %v4752_v40 = vld [vmem:[#allocation5 + $0x930] sm:$0xf]  ;;  %v5479_v42 = vld [vmem:[#allocation5 + $0x948] sm:$0xf0]  ;;  %v5196_v43 = vld [vmem:[#allocation5 + $0x74] sm:$0xf]  ;;  %v5888_v45 = vpack.c.bf16 %v135_v41, %v135_v41  ;;  %v4529_v47 = vor.u32 %v5423_v39, %v4528_v36 }
  0x46   :  { %2372 = vmatpush.bf16.msrb.mxu0 %v4641_v55  ;;  %v3634_v44 = vld [vmem:[#allocation5 + $0x8c] sm:$0xf0]  ;;  %v5252_v48 = vld [vmem:[#allocation5 + $0x234] sm:$0xf]  ;;  %v4753_v50 = vor.u32 %v5479_v42, %v4752_v40  ;;  %v4500_v52 = vld [vmem:[#allocation5 + $0x738] sm:$0xf] }
  0x47   :  { %2385 = vmatpush.bf16.msrb.mxu1 %v4865_v59  ;;  %v3858_v49 = vld [vmem:[#allocation5 + $0x24c] sm:$0xf0]  ;;  %v3637_v51 = vor.u32 %v5196_v43, %v3634_v44  ;;  %v4724_v55 = vld [vmem:[#allocation5 + $0x8f8] sm:$0xf]  ;;  %v5472_v56 = vld [vmem:[#allocation5 + $0x910] sm:$0xf0] }
  0x48   :  { %2423 = vmatpush.bf16.msra.mxu2 %v4001_v54  ;;  %v5416_v54 = vld [vmem:[#allocation5 + $0x750] sm:$0xf0]  ;;  %v5189_v57 = vld [vmem:[#allocation5 + $0x3c] sm:$0xf]  ;;  %v3606_v58 = vld [vmem:[#allocation5 + $0x54] sm:$0xf0]  ;;  %v3861_v59 = vor.u32 %v5252_v48, %v3858_v49  ;;  %v4725_v0 = vor.u32 %v5472_v56, %v4724_v55 }
  0x49   :  { %2411 = vmatpush.bf16.msrb.mxu3 %v3749_v60  ;;  %v4501_v60 = vor.u32 %v5416_v54, %v4500_v52  ;;  %v5245_v61 = vld [vmem:[#allocation5 + $0x1fc] sm:$0xf]  ;;  %v3830_v62 = vld [vmem:[#allocation5 + $0x214] sm:$0xf0]  ;;  %v4472_v63 = vld [vmem:[#allocation5 + $0x700] sm:$0xf]  ;;  %v3609_v1 = vor.u32 %v5189_v57, %v3606_v58 }
  0x4a   :  { %2373 = vmatpush.bf16.msrb.mxu0 %v4613_v6  ;;  %v5409_v2 = vld [vmem:[#allocation5 + $0x718] sm:$0xf0]  ;;  %v4696_v3 = vld [vmem:[#allocation5 + $0x8c0] sm:$0xf]  ;;  %v5182_v6 = vld [vmem:[#allocation5 + $0x4] sm:$0xf]  ;;  %v3833_v12 = vor.u32 %v5245_v61, %v3830_v62 }
  0x4b   :  { %2386 = vmatpush.bf16.msrb.mxu1 %v4837_v10  ;;  %v3578_v7 = vld [vmem:[#allocation5 + $0x1c] sm:$0xf0]  ;;  %v5343_v8 = vld [vmem:[#allocation5 + $0x50c] sm:$0xf]  ;;  %v4222_v9 = vld [vmem:[#allocation5 + $0x524] sm:$0xf0]  ;;  %v4473_v13 = vor.u32 %v5409_v2, %v4472_v63 }
  0x4c   :  { %2424 = vmatpush.bf16.msra.mxu2 %v3973_v5  ;;  %v5465_v5 = vld [vmem:[#allocation5 + $0x8d8] sm:$0xf0]  ;;  %v5399_v10 = vld [vmem:[#allocation5 + $0x6cc] sm:$0xf]  ;;  %v4670_v15 = vld [vmem:[#allocation5 + $0x8a4] sm:$0xf0] }
  0x4d   :  { %2412 = vmatpush.bf16.msrb.mxu3 %v3721_v11  ;;  %v4446_v11 = vld [vmem:[#allocation5 + $0x6e4] sm:$0xf0]  ;;  %v5455_v14 = vld [vmem:[#allocation5 + $0x88c] sm:$0xf]  ;;  %v4697_v17 = vor.u32 %v5465_v5, %v4696_v3  ;;  %v3802_v22 = vld [vmem:[#allocation5 + $0x1dc] sm:$0xf0] }
  0x4e   :  { %2374 = vmatpush.bf16.msrb.mxu0 %v4585_v21  ;;  %v133_v16 = vld [vmem:[#allocation2 + $0x20] sm:$0xff]  ;;  %v5238_v21 = vld [vmem:[#allocation5 + $0x1c4] sm:$0xf]  ;;  %v134_v23 = vld [vmem:[#allocation2 + $0x28] sm:$0xff]  ;;  %v4673_v29 = vor.u32 %v5455_v14, %v4670_v15 }
  0x4f   :  { %2387 = vmatpush.bf16.msrb.mxu1 %v4809_v24  ;;  %v4225_v24 = vor.u32 %v5343_v8, %v4222_v9  ;;  %v5511_v26 = vld [vmem:[#allocation5 + $0xa4c] sm:$0xf]  ;;  %v4894_v27 = vld [vmem:[#allocation5 + $0xa64] sm:$0xf0]  ;;  %v5336_v28 = vld [vmem:[#allocation5 + $0x4d4] sm:$0xf]  ;;  %v3805_v34 = vor.u32 %v5238_v21, %v3802_v22 }
  0x50   :  { %2425 = vmatpush.bf16.msra.mxu2 %v3945_v20  ;;  %v3581_v20 = vor.u32 %v5182_v6, %v3578_v7  ;;  %v4194_v30 = vld [vmem:[#allocation5 + $0x4ec] sm:$0xf0]  ;;  %v5392_v31 = vld [vmem:[#allocation5 + $0x694] sm:$0xf]  ;;  %v5329_v43 = vld [vmem:[#allocation5 + $0x49c] sm:$0xf] }
  0x51   :  { %2413 = vmatpush.bf16.msrb.mxu3 %v3693_v25  ;;  %v4449_v25 = vor.u32 %v5399_v10, %v4446_v11  ;;  %v5448_v35 = vld [vmem:[#allocation5 + $0x854] sm:$0xf]  ;;  %v4642_v36 = vld [vmem:[#allocation5 + $0x86c] sm:$0xf0]  ;;  %v4197_v39 = vor.u32 %v5336_v28, %v4194_v30  ;;  %v4390_v48 = vld [vmem:[#allocation5 + $0x674] sm:$0xf0] }
  0x52   :  { %2375 = vmatpush.bf16.msrb.mxu0 %v4557_v33  ;;  %v5892_v33 = vpack.c.bf16 %v133_v16, %v133_v16  ;;  %v5504_v41 = vld [vmem:[#allocation5 + $0xa14] sm:$0xf]  ;;  %v4866_v42 = vld [vmem:[#allocation5 + $0xa2c] sm:$0xf0]  ;;  %v4645_v44 = vor.u32 %v5448_v35, %v4642_v36  ;;  %v5441_v49 = vld [vmem:[#allocation5 + $0x81c] sm:$0xf] }
  0x53   :  { %2388 = vmatpush.bf16.msrb.mxu1 %v4781_v37  ;;  %4946 = vmatmul.msk.bf16.vlgmr.msrb.gmra.mxu2 %vm2315_vm0, %v5888_v45  ;;  %v5894_v37 = vpack.c.bf16 %v134_v23, %v134_v23  ;;  %v5497_v55 = vld [vmem:[#allocation5 + $0x9dc] sm:$0xf]  ;;  %v4838_v56 = vld [vmem:[#allocation5 + $0x9f4] sm:$0xf0]  ;;  %v5322_v57 = vld [vmem:[#allocation5 + $0x464] sm:$0xf] }
  0x54   :  { %2426 = vmatpush.bf16.msra.mxu2 %v3917_v32  ;;  %v4418_v32 = vld [vmem:[#allocation5 + $0x6ac] sm:$0xf0]  ;;  %v4362_v61 = vld [vmem:[#allocation5 + $0x63c] sm:$0xf0]  ;;  %v5434_v62 = vld [vmem:[#allocation5 + $0x7e4] sm:$0xf] }
  0x55   :  { %2414 = vmatpush.bf16.msrb.mxu3 %v3665_v38  ;;  %v4897_v38 = vor.u32 %v5511_v26, %v4894_v27  ;;  %v4421_v40 = vor.u32 %v5392_v31, %v4418_v32  ;;  %v4586_v63 = vld [vmem:[#allocation5 + $0x7fc] sm:$0xf0]  ;;  %v5490_v3 = vld [vmem:[#allocation5 + $0x9a4] sm:$0xf]  ;;  %v5315_v6 = vld [vmem:[#allocation5 + $0x42c] sm:$0xf] }
  0x56   :  { %2376 = vmatpush.bf16.msrb.mxu0 %v4529_v47  ;;  %v5385_v47 = vld [vmem:[#allocation5 + $0x65c] sm:$0xf]  ;;  %v4810_v5 = vld [vmem:[#allocation5 + $0x9bc] sm:$0xf0]  ;;  %v4589_v7 = vor.u32 %v5434_v62, %v4586_v63  ;;  %v4110_v8 = vld [vmem:[#allocation5 + $0x444] sm:$0xf0] }
  0x57   :  { %2389 = vmatpush.bf16.msrb.mxu1 %v4753_v50  ;;  %v4614_v50 = vld [vmem:[#allocation5 + $0x834] sm:$0xf0]  ;;  %v4393_v54 = vor.u32 %v5385_v47, %v4390_v48  ;;  %v5371_v9 = vld [vmem:[#allocation5 + $0x5ec] sm:$0xf]  ;;  %v4334_v10 = vld [vmem:[#allocation5 + $0x604] sm:$0xf0]  ;;  %v4113_v14 = vor.u32 %v5315_v6, %v4110_v8 }
  0x58   :  { %2427 = vmatpush.bf16.msra.mxu2 %v3889_v46  ;;  %v4166_v46 = vld [vmem:[#allocation5 + $0x4b4] sm:$0xf0]  ;;  %v4617_v58 = vor.u32 %v5441_v49, %v4614_v50  ;;  %v5427_v11 = vld [vmem:[#allocation5 + $0x7ac] sm:$0xf]  ;;  %v4337_v15 = vor.u32 %v5371_v9, %v4334_v10  ;;  %v4082_v22 = vld [vmem:[#allocation5 + $0x40c] sm:$0xf0] }
  0x59   :  { %2415 = vmatpush.bf16.msrb.mxu3 %v3637_v51  ;;  %v4869_v51 = vor.u32 %v5504_v41, %v4866_v42  ;;  %v4169_v52 = vor.u32 %v5329_v43, %v4166_v46  ;;  %v5483_v16 = vld [vmem:[#allocation5 + $0x96c] sm:$0xf]  ;;  %v5364_v23 = vld [vmem:[#allocation5 + $0x5b4] sm:$0xf]  ;;  %v4530_v26 = vld [vmem:[#allocation5 + $0x78c] sm:$0xf0] }
  0x5a   :  { %2377 = vmatpush.bf16.msrb.mxu0 %v4501_v60  ;;  %v5378_v60 = vld [vmem:[#allocation5 + $0x624] sm:$0xf]  ;;  %v5476_v30 = vld [vmem:[#allocation5 + $0x934] sm:$0xf]  ;;  %v4754_v31 = vld [vmem:[#allocation5 + $0x94c] sm:$0xf0] }
  0x5b   :  { %2390 = vmatpush.bf16.msrb.mxu1 %v4725_v0  ;;  %v4841_v0 = vor.u32 %v5497_v55, %v4838_v56  ;;  %v4365_v2 = vor.u32 %v5378_v60, %v4362_v61  ;;  %v5301_v32 = vld [vmem:[#allocation5 + $0x3bc] sm:$0xf]  ;;  %v4054_v35 = vld [vmem:[#allocation5 + $0x3d4] sm:$0xf0]  ;;  %v4757_v41 = vor.u32 %v5476_v30, %v4754_v31  ;;  %v5294_v47 = vld [vmem:[#allocation5 + $0x384] sm:$0xf] }
  0x5c   :  { %2428 = vmatpush.bf16.msra.mxu2 %v3861_v59  ;;  %v4138_v59 = vld [vmem:[#allocation5 + $0x47c] sm:$0xf0]  ;;  %v5357_v36 = vld [vmem:[#allocation5 + $0x57c] sm:$0xf]  ;;  %v4726_v43 = vld [vmem:[#allocation5 + $0x914] sm:$0xf0] }
  0x5d   :  { %2416 = vmatpush.bf16.msrb.mxu3 %v3609_v1  ;;  %v4141_v1 = vor.u32 %v5322_v57, %v4138_v59  ;;  %v5469_v42 = vld [vmem:[#allocation5 + $0x8fc] sm:$0xf]  ;;  %v4026_v48 = vld [vmem:[#allocation5 + $0x39c] sm:$0xf0]  ;;  %v5350_v49 = vld [vmem:[#allocation5 + $0x544] sm:$0xf] }
  0x5e   :  { %2378 = vmatpush.bf16.msrb.mxu0 %v4473_v13  ;;  %v4813_v13 = vor.u32 %v5490_v3, %v4810_v5  ;;  %v3780_v55 = vld [vmem:[#allocation5 + $0x190] sm:$0xf]  ;;  %v5235_v56 = vld [vmem:[#allocation5 + $0x1a8] sm:$0xf0]  ;;  %v5518_v60 = vld [vmem:[#allocation5 + $0xa84] sm:$0xf]  ;;  %v4029_v62 = vor.u32 %v5294_v47, %v4026_v48 }
  0x5f   :  { %2391 = vmatpush.bf16.msrb.mxu1 %v4697_v17  ;;  %v4782_v17 = vld [vmem:[#allocation5 + $0x984] sm:$0xf0]  ;;  %v4004_v57 = vld [vmem:[#allocation5 + $0x350] sm:$0xf]  ;;  %v5291_v59 = vld [vmem:[#allocation5 + $0x368] sm:$0xf0]  ;;  %v3781_v5 = vor.u32 %v5235_v56, %v3780_v55 }
  0x60   :  { %2429 = vmatpush.bf16.msra.mxu2 %v3833_v12  ;;  %v4558_v12 = vld [vmem:[#allocation5 + $0x7c4] sm:$0xf0]  ;;  %v4785_v27 = vor.u32 %v5483_v16, %v4782_v17  ;;  %v4922_v61 = vld [vmem:[#allocation5 + $0xa9c] sm:$0xf0]  ;;  %v5347_v6 = vld [vmem:[#allocation5 + $0x528] sm:$0xf0]  ;;  %v4005_v9 = vor.u32 %v5291_v59, %v4004_v57 }
  0x61   :  { %2417 = vmatpush.bf16.msrb.mxu3 %v3581_v20  ;;  %2379 = vmatmul.bf16.vlgmr.msrb.gmra.mxu0 %v5892_v33  ;;  %v5308_v20 = vld [vmem:[#allocation5 + $0x3f4] sm:$0xf]  ;;  %v4561_v21 = vor.u32 %v5427_v11, %v4558_v12  ;;  %v5403_v8 = vld [vmem:[#allocation5 + $0x6e8] sm:$0xf0]  ;;  %v4925_v10 = vor.u32 %v5518_v60, %v4922_v61  ;;  %v3752_v11 = vld [vmem:[#allocation5 + $0x158] sm:$0xf] }
  0x62   :  { %2436 = vmatpush.bf16.msra.mxu0 %v4225_v24  ;;  %2392 = vmatmul.bf16.vlgmr.msrb.gmra.mxu1 %v5894_v37  ;;  %v4306_v24 = vld [vmem:[#allocation5 + $0x5cc] sm:$0xf0]  ;;  %v4085_v28 = vor.u32 %v5308_v20, %v4082_v22  ;;  %v5228_v12 = vld [vmem:[#allocation5 + $0x170] sm:$0xf0]  ;;  %v4200_v20 = vld [vmem:[#allocation5 + $0x4d8] sm:$0xf] }
  0x63   :  { %2449 = vmatpush.bf16.msra.mxu1 %v4449_v25  ;;  %v5420_v25 = vld [vmem:[#allocation5 + $0x774] sm:$0xf]  ;;  %v4144_v47 = vld [vmem:[#allocation5 + $0x468] sm:$0xf]  ;;  %v5207_v55 = vld [vmem:[#allocation5 + $0xc8] sm:$0xf0] }
  0x64   :  { %2430 = vmatpush.bf16.msra.mxu2 %v3805_v34  ;;  %2418 = vmatmul.bf16.vlgmr.msrb.gmra.mxu3 %v5879_v4  ;;  %v4533_v34 = vor.u32 %v5420_v25, %v4530_v26  ;;  %v5340_v22 = vld [vmem:[#allocation5 + $0x4f0] sm:$0xf0]  ;;  %v3724_v26 = vld [vmem:[#allocation5 + $0x120] sm:$0xf]  ;;  %v3892_v56 = vld [vmem:[#allocation5 + $0x270] sm:$0xf] }
  0x65   :  { %2462 = vmatpush.bf16.msra.mxu3 %v4673_v29  ;;  %v4309_v29 = vor.u32 %v5364_v23, %v4306_v24  ;;  %v4424_v23 = vld [vmem:[#allocation5 + $0x698] sm:$0xf]  ;;  %v5396_v24 = vld [vmem:[#allocation5 + $0x6b0] sm:$0xf0]  ;;  %v4201_v30 = vor.u32 %v5340_v22, %v4200_v20  ;;  %v5263_v57 = vld [vmem:[#allocation5 + $0x288] sm:$0xf0] }
  0x66   :  { %2437 = vmatpush.bf16.msra.mxu0 %v4197_v39  ;;  %v5413_v39 = vld [vmem:[#allocation5 + $0x73c] sm:$0xf]  ;;  %v4425_v31 = vor.u32 %v5396_v24, %v4424_v23  ;;  %v4116_v60 = vld [vmem:[#allocation5 + $0x430] sm:$0xf]  ;;  %v4060_v23 = vld [vmem:[#allocation5 + $0x3c0] sm:$0xf] }
  0x67   :  { %2450 = vmatpush.bf16.msra.mxu1 %v4421_v40  ;;  %2431 = vmatmul.bf16.vlgmr.msra.gmra.mxu2 %v5882_v18  ;;  %v4502_v40 = vld [vmem:[#allocation5 + $0x754] sm:$0xf0]  ;;  %v5249_v20 = vld [vmem:[#allocation5 + $0x218] sm:$0xf0] }
  0x68   :  { %2475 = vmatpush.bf16.msrb.mxu2 %v4897_v38  ;;  %v4278_v38 = vld [vmem:[#allocation5 + $0x594] sm:$0xf0]  ;;  %v4505_v50 = vor.u32 %v5413_v39, %v4502_v40  ;;  %v3696_v40 = vld [vmem:[#allocation5 + $0xe8] sm:$0xf]  ;;  %v5305_v24 = vld [vmem:[#allocation5 + $0x3d8] sm:$0xf0] }
  0x69   :  { %2463 = vmatpush.bf16.msra.mxu3 %v4645_v44  ;;  %v4057_v44 = vor.u32 %v5301_v32, %v4054_v35  ;;  %v4281_v46 = vor.u32 %v5357_v36, %v4278_v38  ;;  %v4172_v32 = vld [vmem:[#allocation5 + $0x4a0] sm:$0xf]  ;;  %v5333_v35 = vld [vmem:[#allocation5 + $0x4b8] sm:$0xf0] }
  0x6a   :  { %2438 = vmatpush.bf16.msra.mxu0 %v4169_v52  ;;  %v5406_v52 = vld [vmem:[#allocation5 + $0x704] sm:$0xf]  ;;  %v4396_v36 = vld [vmem:[#allocation5 + $0x660] sm:$0xf]  ;;  %v5389_v38 = vld [vmem:[#allocation5 + $0x678] sm:$0xf0] }
  0x6b   :  { %2451 = vmatpush.bf16.msra.mxu1 %v4393_v54  ;;  %v4474_v54 = vld [vmem:[#allocation5 + $0x71c] sm:$0xf0] }
  0x6c   :  { %2476 = vmatpush.bf16.msrb.mxu2 %v4869_v51  ;;  %v4250_v51 = vld [vmem:[#allocation5 + $0x55c] sm:$0xf0]  ;;  %v4477_v3 = vor.u32 %v5406_v52, %v4474_v54  ;;  %v3668_v54 = vld [vmem:[#allocation5 + $0xb0] sm:$0xf] }
  0x6d   :  { %2464 = vmatpush.bf16.msra.mxu3 %v4617_v58  ;;  %v4729_v58 = vor.u32 %v5469_v42, %v4726_v43  ;;  %v4253_v63 = vor.u32 %v5350_v49, %v4250_v51  ;;  %v3920_v42 = vld [vmem:[#allocation5 + $0x2a8] sm:$0xf]  ;;  %v5270_v43 = vld [vmem:[#allocation5 + $0x2c0] sm:$0xf0]  ;;  %v3669_v61 = vor.u32 %v5207_v55, %v3668_v54  ;;  %v4648_v55 = vld [vmem:[#allocation5 + $0x858] sm:$0xf] }
  0x6e   :  { %2439 = vmatpush.bf16.msra.mxu0 %v4141_v1  ;;  %v4698_v1 = vld [vmem:[#allocation5 + $0x8dc] sm:$0xf0]  ;;  %v5326_v49 = vld [vmem:[#allocation5 + $0x480] sm:$0xf0]  ;;  %v3921_v52 = vor.u32 %v5270_v43, %v3920_v42 }
  0x6f   :  { %2452 = vmatpush.bf16.msra.mxu1 %v4365_v2  ;;  %v4228_v2 = vld [vmem:[#allocation5 + $0x510] sm:$0xf]  ;;  %v5382_v51 = vld [vmem:[#allocation5 + $0x640] sm:$0xf0] }
  0x70   :  { %2477 = vmatpush.bf16.msrb.mxu2 %v4841_v0  ;;  %v5462_v0 = vld [vmem:[#allocation5 + $0x8c4] sm:$0xf]  ;;  %v4229_v16 = vor.u32 %v5347_v6, %v4228_v2  ;;  %v3640_v2 = vld [vmem:[#allocation5 + $0x78] sm:$0xf]  ;;  %v5256_v6 = vld [vmem:[#allocation5 + $0x250] sm:$0xf0] }
  0x71   :  { %2465 = vmatpush.bf16.msra.mxu3 %v4589_v7  ;;  %v4452_v7 = vld [vmem:[#allocation5 + $0x6d0] sm:$0xf]  ;;  %v5298_v42 = vld [vmem:[#allocation5 + $0x3a0] sm:$0xf0] }
  0x72   :  { %2440 = vmatpush.bf16.msra.mxu0 %v4113_v14  ;;  %v3976_v14 = vld [vmem:[#allocation5 + $0x318] sm:$0xf]  ;;  %v4453_v17 = vor.u32 %v5403_v8, %v4452_v7 }
  0x73   :  { %2453 = vmatpush.bf16.msra.mxu1 %v4337_v15  ;;  %v5284_v15 = vld [vmem:[#allocation5 + $0x330] sm:$0xf0] }
  0x74   :  { %2478 = vmatpush.bf16.msrb.mxu2 %v4813_v13  ;;  %v4701_v13 = vor.u32 %v5462_v0, %v4698_v1  ;;  %v3977_v25 = vor.u32 %v5284_v15, %v3976_v14  ;;  %v5375_v0 = vld [vmem:[#allocation5 + $0x608] sm:$0xf0]  ;;  %v3893_v1 = vor.u32 %v5263_v57, %v3892_v56  ;;  %v3612_v15 = vld [vmem:[#allocation5 + $0x40] sm:$0xf]  ;;  %v5452_v56 = vld [vmem:[#allocation5 + $0x870] sm:$0xf0] }
  0x75   :  { %2466 = vmatpush.bf16.msra.mxu3 %v4561_v21  ;;  %v3753_v21 = vor.u32 %v5228_v12, %v3752_v11  ;;  %v5312_v11 = vld [vmem:[#allocation5 + $0x410] sm:$0xf0]  ;;  %v4312_v12 = vld [vmem:[#allocation5 + $0x5b8] sm:$0xf] }
  0x76   :  { %2441 = vmatpush.bf16.msra.mxu0 %v4085_v28  ;;  %v3948_v28 = vld [vmem:[#allocation5 + $0x2e0] sm:$0xf] }
  0x77   :  { %2454 = vmatpush.bf16.msra.mxu1 %v4309_v29  ;;  %v5277_v29 = vld [vmem:[#allocation5 + $0x2f8] sm:$0xf0] }
  0x78   :  { %2479 = vmatpush.bf16.msrb.mxu2 %v4785_v27  ;;  %v5221_v27 = vld [vmem:[#allocation5 + $0x138] sm:$0xf0]  ;;  %v3949_v39 = vor.u32 %v5277_v29, %v3948_v28  ;;  %v3584_v28 = vld [vmem:[#allocation5 + $0x8] sm:$0xf] }
  0x79   :  { %2467 = vmatpush.bf16.msra.mxu3 %v4533_v34  ;;  %v3725_v34 = vor.u32 %v5221_v27, %v3724_v26  ;;  %v4284_v26 = vld [vmem:[#allocation5 + $0x580] sm:$0xf]  ;;  %v5361_v27 = vld [vmem:[#allocation5 + $0x598] sm:$0xf0] }
  0x7a   :  { %2442 = vmatpush.bf16.msra.mxu0 %v4057_v44  ;;  %v4173_v44 = vor.u32 %v5333_v35, %v4172_v32  ;;  %v5242_v32 = vld [vmem:[#allocation5 + $0x1e0] sm:$0xf0]  ;;  %v5459_v35 = vld [vmem:[#allocation5 + $0x8a8] sm:$0xf0] }
  0x7b   :  { %2455 = vmatpush.bf16.msra.mxu1 %v4281_v46  ;;  %v4397_v46 = vor.u32 %v5389_v38, %v4396_v36  ;;  %v4900_v36 = vld [vmem:[#allocation5 + $0xa50] sm:$0xf]  ;;  %v4061_v38 = vor.u32 %v5305_v24, %v4060_v23  ;;  %v4816_v23 = vld [vmem:[#allocation5 + $0x9a8] sm:$0xf]  ;;  %v5494_v24 = vld [vmem:[#allocation5 + $0x9c0] sm:$0xf0] }
  0x7c   :  { %2480 = vmatpush.bf16.msrb.mxu2 %v4757_v41  ;;  %v5214_v41 = vld [vmem:[#allocation5 + $0x100] sm:$0xf0] }
  0x7d   :  { %2468 = vmatpush.bf16.msra.mxu3 %v4505_v50  ;;  %v3697_v48 = vor.u32 %v5214_v41, %v3696_v40  ;;  %v4368_v50 = vld [vmem:[#allocation5 + $0x628] sm:$0xf]  ;;  %v5515_v40 = vld [vmem:[#allocation5 + $0xa68] sm:$0xf0] }
  0x7e   :  { %2443 = vmatpush.bf16.msra.mxu0 %v4029_v62  ;;  %v4369_v59 = vor.u32 %v5382_v51, %v4368_v50  ;;  %v5319_v62 = vld [vmem:[#allocation5 + $0x448] sm:$0xf0]  ;;  %v4032_v41 = vld [vmem:[#allocation5 + $0x388] sm:$0xf]  ;;  %v3782_v50 = vld [vmem:[#allocation5 + $0x1ac] sm:$0xf0]  ;;  %v4901_v54 = vor.u32 %v5515_v40, %v4900_v36 }
  0x7f   :  { %2456 = vmatpush.bf16.msra.mxu1 %v4253_v63  ;;  %v4340_v63 = vld [vmem:[#allocation5 + $0x5f0] sm:$0xf]  ;;  %v4117_v7 = vor.u32 %v5319_v62, %v4116_v60  ;;  %v4928_v51 = vld [vmem:[#allocation5 + $0xa88] sm:$0xf]  ;;  %v4033_v57 = vor.u32 %v5298_v42, %v4032_v41  ;;  %v5508_v60 = vld [vmem:[#allocation5 + $0xa30] sm:$0xf0] }
  0x80   :  { %2481 = vmatpush.bf16.msrb.mxu2 %v4729_v58  ;;  %v4145_v58 = vor.u32 %v5326_v49, %v4144_v47  ;;  %v4341_v8 = vor.u32 %v5375_v0, %v4340_v63  ;;  %v5232_v47 = vld [vmem:[#allocation5 + $0x194] sm:$0xf]  ;;  %v4006_v0 = vld [vmem:[#allocation5 + $0x36c] sm:$0xf0]  ;;  %v5267_v40 = vld [vmem:[#allocation5 + $0x2ac] sm:$0xf] }
  0x81   :  { %2469 = vmatpush.bf16.msra.mxu3 %v4477_v3  ;;  %2444 = vmatmul.bf16.vlgmr.msra.gmra.mxu0 %v5876_v53  ;;  %v5200_v3 = vld [vmem:[#allocation5 + $0x90] sm:$0xf0]  ;;  %v4788_v36 = vld [vmem:[#allocation5 + $0x970] sm:$0xf]  ;;  %v3922_v41 = vld [vmem:[#allocation5 + $0x2c4] sm:$0xf0] }
  0x82   :  { %2495 = vmatpush.bf16.msrb.mxu0 %v4925_v10  ;;  %2457 = vmatmul.bf16.vlgmr.msra.gmra.mxu1 %v5884_v19  ;;  %v3641_v10 = vor.u32 %v5200_v3, %v3640_v2  ;;  %v5288_v63 = vld [vmem:[#allocation5 + $0x354] sm:$0xf]  ;;  %v5225_v2 = vld [vmem:[#allocation5 + $0x15c] sm:$0xf]  ;;  %v3754_v3 = vld [vmem:[#allocation5 + $0x174] sm:$0xf0] }
  0x83   :  { %2501 = vmatpush.bf16.msrb.mxu1 %v3781_v5  ;;  %v3864_v5 = vld [vmem:[#allocation5 + $0x238] sm:$0xf] }
  0x84   :  { %2482 = vmatpush.bf16.msrb.mxu2 %v4701_v13  ;;  %2470 = vmatmul.bf16.vlgmr.msra.gmra.mxu3 %v5892_v33  ;;  %v5368_v13 = vld [vmem:[#allocation5 + $0x5d0] sm:$0xf0]  ;;  %v3865_v14 = vor.u32 %v5256_v6, %v3864_v5  ;;  %v4620_v6 = vld [vmem:[#allocation5 + $0x820] sm:$0xf] }
  0x85   :  { %2514 = vmatpush.bf16.msrb.mxu3 %v4005_v9  ;;  %v4088_v9 = vld [vmem:[#allocation5 + $0x3f8] sm:$0xf]  ;;  %v4313_v22 = vor.u32 %v5368_v13, %v4312_v12  ;;  %v5281_v12 = vld [vmem:[#allocation5 + $0x31c] sm:$0xf] }
  0x86   :  { %2527 = vmatpush.bf16.msra.mxu0 %v4229_v16  ;;  %v5193_v16 = vld [vmem:[#allocation5 + $0x58] sm:$0xf0]  ;;  %v3978_v13 = vld [vmem:[#allocation5 + $0x334] sm:$0xf0] }
  0x87   :  { %2502 = vmatpush.bf16.msrb.mxu1 %v3753_v21  ;;  %2483 = vmatmul.bf16.vlgmr.msrb.gmra.mxu2 %v5894_v37  ;;  %v4089_v21 = vor.u32 %v5312_v11, %v4088_v9  ;;  %v4844_v9 = vld [vmem:[#allocation5 + $0x9e0] sm:$0xf]  ;;  %v3757_v11 = vor.u32 %v5225_v2, %v3754_v3  ;;  %v5253_v2 = vld [vmem:[#allocation5 + $0x23c] sm:$0xf]  ;;  %v3866_v3 = vld [vmem:[#allocation5 + $0x254] sm:$0xf0] }
  0x88   :  { %2540 = vmatpush.bf16.msra.mxu2 %v4453_v17  ;;  %v3836_v17 = vld [vmem:[#allocation5 + $0x200] sm:$0xf] }
  0x89   :  { %2515 = vmatpush.bf16.msrb.mxu3 %v3977_v25  ;;  %v3613_v25 = vor.u32 %v5193_v16, %v3612_v15  ;;  %v3837_v29 = vor.u32 %v5249_v20, %v3836_v17  ;;  %v5218_v15 = vld [vmem:[#allocation5 + $0x124] sm:$0xf]  ;;  %v3726_v16 = vld [vmem:[#allocation5 + $0x13c] sm:$0xf0]  ;;  %v4592_v20 = vld [vmem:[#allocation5 + $0x7e8] sm:$0xf] }
  0x8a   :  { %2528 = vmatpush.bf16.msra.mxu0 %v4201_v30  ;;  %v5186_v30 = vld [vmem:[#allocation5 + $0x20] sm:$0xf0] }
  0x8b   :  { %2503 = vmatpush.bf16.msrb.mxu1 %v3725_v34  ;;  %v4676_v34 = vld [vmem:[#allocation5 + $0x890] sm:$0xf]  ;;  %v3585_v43 = vor.u32 %v5186_v30, %v3584_v28  ;;  %v3698_v30 = vld [vmem:[#allocation5 + $0x104] sm:$0xf0] }
  0x8c   :  { %2541 = vmatpush.bf16.msra.mxu2 %v4425_v31  ;;  %v3808_v31 = vld [vmem:[#allocation5 + $0x1c8] sm:$0xf]  ;;  %v4677_v49 = vor.u32 %v5459_v35, %v4676_v34  ;;  %v5431_v34 = vld [vmem:[#allocation5 + $0x7c8] sm:$0xf0] }
  0x8d   :  { %2516 = vmatpush.bf16.msrb.mxu3 %v3949_v39  ;;  %v4285_v39 = vor.u32 %v5361_v27, %v4284_v26  ;;  %v5274_v26 = vld [vmem:[#allocation5 + $0x2e4] sm:$0xf]  ;;  %v3950_v27 = vld [vmem:[#allocation5 + $0x2fc] sm:$0xf0] }
  0x8e   :  { %2529 = vmatpush.bf16.msra.mxu0 %v4173_v44  ;;  %v4256_v44 = vld [vmem:[#allocation5 + $0x548] sm:$0xf]  ;;  %v3953_v35 = vor.u32 %v5274_v26, %v3950_v27 }
  0x8f   :  { %2504 = vmatpush.bf16.msrb.mxu1 %v3697_v48  ;;  %v3809_v48 = vor.u32 %v5242_v32, %v3808_v31  ;;  %v4817_v31 = vor.u32 %v5494_v24, %v4816_v23  ;;  %v4564_v32 = vld [vmem:[#allocation5 + $0x7b0] sm:$0xf]  ;;  %v5183_v24 = vld [vmem:[#allocation5 + $0xc] sm:$0xf] }
  0x90   :  { %2542 = vmatpush.bf16.msra.mxu2 %v4397_v46  ;;  %v5354_v46 = vld [vmem:[#allocation5 + $0x560] sm:$0xf0]  ;;  %v4565_v42 = vor.u32 %v5431_v34, %v4564_v32  ;;  %v5337_v32 = vld [vmem:[#allocation5 + $0x4dc] sm:$0xf]  ;;  %v4202_v34 = vld [vmem:[#allocation5 + $0x4f4] sm:$0xf0] }
  0x91   :  { %2517 = vmatpush.bf16.msrb.mxu3 %v3921_v52  ;;  %4947 = vmatmul.msk.bf16.vlgmr.msrb.gmra.mxu0 %vm2315_vm0, %v5888_v45  ;;  %v5522_v52 = vld [vmem:[#allocation5 + $0xaa0] sm:$0xf0] }
  0x92   :  { %2530 = vmatpush.bf16.msra.mxu0 %v4145_v58  ;;  %v4257_v58 = vor.u32 %v5354_v46, %v4256_v44  ;;  %v4929_v62 = vor.u32 %v5522_v52, %v4928_v51  ;;  %v3670_v44 = vld [vmem:[#allocation5 + $0xcc] sm:$0xf0]  ;;  %v5480_v51 = vld [vmem:[#allocation5 + $0x950] sm:$0xf0] }
  0x93   :  { %2505 = vmatpush.bf16.msrb.mxu1 %v3669_v61  ;;  %v3785_v61 = vor.u32 %v5232_v47, %v3782_v50  ;;  %v4536_v47 = vld [vmem:[#allocation5 + $0x778] sm:$0xf] }
  0x94   :  { %2543 = vmatpush.bf16.msra.mxu2 %v4369_v59  ;;  %v4872_v59 = vld [vmem:[#allocation5 + $0xa18] sm:$0xf] }
  0x95   :  { %2518 = vmatpush.bf16.msrb.mxu3 %v3893_v1  ;;  %v4649_v1 = vor.u32 %v5452_v56, %v4648_v55  ;;  %v4873_v5 = vor.u32 %v5508_v60, %v4872_v59  ;;  %v4760_v50 = vld [vmem:[#allocation5 + $0x938] sm:$0xf]  ;;  %v3894_v55 = vld [vmem:[#allocation5 + $0x28c] sm:$0xf0]  ;;  %v4508_v60 = vld [vmem:[#allocation5 + $0x740] sm:$0xf] }
  0x96   :  { %2531 = vmatpush.bf16.msra.mxu0 %v4117_v7  ;;  %v5445_v7 = vld [vmem:[#allocation5 + $0x838] sm:$0xf0]  ;;  %v4761_v59 = vor.u32 %v5480_v51, %v4760_v50  ;;  %v5330_v50 = vld [vmem:[#allocation5 + $0x4a4] sm:$0xf]  ;;  %v4174_v51 = vld [vmem:[#allocation5 + $0x4bc] sm:$0xf0] }
  0x97   :  { %2506 = vmatpush.bf16.msrb.mxu1 %v3641_v10  ;;  %v5501_v10 = vld [vmem:[#allocation5 + $0x9f8] sm:$0xf0] }
  0x98   :  { %2544 = vmatpush.bf16.msra.mxu2 %v4341_v8  ;;  %v4009_v8 = vor.u32 %v5288_v63, %v4006_v0  ;;  %v4845_v17 = vor.u32 %v5501_v10, %v4844_v9  ;;  %v4732_v63 = vld [vmem:[#allocation5 + $0x900] sm:$0xf]  ;;  %v5473_v0 = vld [vmem:[#allocation5 + $0x918] sm:$0xf0]  ;;  %v5410_v10 = vld [vmem:[#allocation5 + $0x720] sm:$0xf0] }
  0x99   :  { %2519 = vmatpush.bf16.msrb.mxu3 %v3865_v14  ;;  %v4621_v14 = vor.u32 %v5445_v7, %v4620_v6  ;;  %v5190_v6 = vld [vmem:[#allocation5 + $0x44] sm:$0xf]  ;;  %v3614_v7 = vld [vmem:[#allocation5 + $0x5c] sm:$0xf0]  ;;  %v4733_v9 = vor.u32 %v5473_v0, %v4732_v63  ;;  %v5323_v63 = vld [vmem:[#allocation5 + $0x46c] sm:$0xf] }
  0x9a   :  { %2532 = vmatpush.bf16.msra.mxu0 %v4089_v21  ;;  %v5438_v21 = vld [vmem:[#allocation5 + $0x800] sm:$0xf0]  ;;  %v4146_v0 = vld [vmem:[#allocation5 + $0x484] sm:$0xf0] }
  0x9b   :  { %2507 = vmatpush.bf16.msrb.mxu1 %v3613_v25  ;;  %v3729_v25 = vor.u32 %v5218_v15, %v3726_v16  ;;  %v4593_v28 = vor.u32 %v5438_v21, %v4592_v20  ;;  %v4230_v15 = vld [vmem:[#allocation5 + $0x52c] sm:$0xf0]  ;;  %v5400_v16 = vld [vmem:[#allocation5 + $0x6d4] sm:$0xf]  ;;  %v5246_v21 = vld [vmem:[#allocation5 + $0x204] sm:$0xf] }
  0x9c   :  { %2545 = vmatpush.bf16.msra.mxu2 %v4313_v22  ;;  %v3981_v22 = vor.u32 %v5281_v12, %v3978_v13  ;;  %v5466_v12 = vld [vmem:[#allocation5 + $0x8e0] sm:$0xf0]  ;;  %v3869_v13 = vor.u32 %v5253_v2, %v3866_v3  ;;  %v4454_v20 = vld [vmem:[#allocation5 + $0x6ec] sm:$0xf0]  ;;  %v5379_v2 = vld [vmem:[#allocation5 + $0x62c] sm:$0xf] }
  0x9d   :  { %2520 = vmatpush.bf16.msrb.mxu3 %v3837_v29  ;;  %v5211_v29 = vld [vmem:[#allocation5 + $0xec] sm:$0xf]  ;;  %v4370_v3 = vld [vmem:[#allocation5 + $0x644] sm:$0xf0] }
  0x9e   :  { %2533 = vmatpush.bf16.msra.mxu0 %v4061_v38  ;;  %v5487_v38 = vld [vmem:[#allocation5 + $0x988] sm:$0xf0] }
  0x9f   :  { %2508 = vmatpush.bf16.msrb.mxu1 %v3585_v43  ;;  %v5204_v43 = vld [vmem:[#allocation5 + $0xb4] sm:$0xf]  ;;  %v4789_v46 = vor.u32 %v5487_v38, %v4788_v36  ;;  %v4426_v38 = vld [vmem:[#allocation5 + $0x6b4] sm:$0xf0] }
  0xa0   :  { %2546 = vmatpush.bf16.msra.mxu2 %v4285_v39  ;;  %v3701_v39 = vor.u32 %v5211_v29, %v3698_v30  ;;  %v3673_v52 = vor.u32 %v5204_v43, %v3670_v44  ;;  %v4678_v29 = vld [vmem:[#allocation5 + $0x8ac] sm:$0xf0]  ;;  %v4457_v30 = vor.u32 %v5400_v16, %v4454_v20  ;;  %v4205_v44 = vor.u32 %v5337_v32, %v4202_v34  ;;  %v5372_v16 = vld [vmem:[#allocation5 + $0x5f4] sm:$0xf]  ;;  %v4314_v32 = vld [vmem:[#allocation5 + $0x5d4] sm:$0xf0] }
  0xa1   :  { %2521 = vmatpush.bf16.msrb.mxu3 %v3809_v48  ;;  %v5424_v48 = vld [vmem:[#allocation5 + $0x790] sm:$0xf0]  ;;  %v4902_v43 = vld [vmem:[#allocation5 + $0xa6c] sm:$0xf0] }
  0xa2   :  { %2534 = vmatpush.bf16.msra.mxu0 %v4033_v57  ;;  %2509 = vmatmul.bf16.vlgmr.msrb.gmra.mxu1 %v5879_v4  ;;  %v4537_v56 = vor.u32 %v5424_v48, %v4536_v47  ;;  %v5197_v57 = vld [vmem:[#allocation5 + $0x7c] sm:$0xf]  ;;  %v4650_v47 = vld [vmem:[#allocation5 + $0x874] sm:$0xf0] }
  0xa3   :  { %2553 = vmatpush.bf16.msra.mxu1 %v4677_v49  ;;  %v3925_v49 = vor.u32 %v5267_v40, %v3922_v41  ;;  %v3810_v40 = vld [vmem:[#allocation5 + $0x1e4] sm:$0xf0] }
  0xa4   :  { %2547 = vmatpush.bf16.msra.mxu2 %v4257_v58  ;;  %2522 = vmatmul.bf16.vlgmr.msrb.gmra.mxu3 %v5882_v18  ;;  %v3642_v58 = vld [vmem:[#allocation5 + $0x94] sm:$0xf0] }
  0xa5   :  { %2566 = vmatpush.bf16.msra.mxu3 %v4901_v54  ;;  %2535 = vmatmul.bf16.vlgmr.msra.gmra.mxu0 %v5876_v53  ;;  %v5260_v54 = vld [vmem:[#allocation5 + $0x274] sm:$0xf] }
  0xa6   :  { %2586 = vmatpush.bf16.msrb.mxu0 %v4929_v62  ;;  %v3897_v62 = vor.u32 %v5260_v54, %v3894_v55  ;;  %v5386_v54 = vld [vmem:[#allocation5 + $0x664] sm:$0xf]  ;;  %v4398_v55 = vld [vmem:[#allocation5 + $0x67c] sm:$0xf0] }
  0xa7   :  { %2554 = vmatpush.bf16.msra.mxu1 %v4649_v1  ;;  %2548 = vmatmul.bf16.vlgmr.msra.gmra.mxu2 %v5884_v19  ;;  %v3645_v1 = vor.u32 %v5197_v57, %v3642_v58  ;;  %v5505_v57 = vld [vmem:[#allocation5 + $0xa1c] sm:$0xf]  ;;  %v4874_v58 = vld [vmem:[#allocation5 + $0xa34] sm:$0xf0] }
  0xa8   :  { %2592 = vmatpush.bf16.msrb.mxu2 %v3785_v61  ;;  %v5417_v61 = vld [vmem:[#allocation5 + $0x758] sm:$0xf0] }
  0xa9   :  { %2567 = vmatpush.bf16.msra.mxu3 %v4873_v5  ;;  %v4509_v5 = vor.u32 %v5417_v61, %v4508_v60  ;;  %v5442_v60 = vld [vmem:[#allocation5 + $0x824] sm:$0xf]  ;;  %v4622_v61 = vld [vmem:[#allocation5 + $0x83c] sm:$0xf0] }
  0xaa   :  { %2605 = vmatpush.bf16.msra.mxu0 %v4009_v8  ;;  %v4480_v8 = vld [vmem:[#allocation5 + $0x708] sm:$0xf] }
  0xab   :  { %2555 = vmatpush.bf16.msra.mxu1 %v4621_v14  ;;  %v5344_v14 = vld [vmem:[#allocation5 + $0x514] sm:$0xf]  ;;  %v4481_v23 = vor.u32 %v5410_v10, %v4480_v8  ;;  %v4149_v8 = vor.u32 %v5323_v63, %v4146_v0  ;;  %v4594_v10 = vld [vmem:[#allocation5 + $0x804] sm:$0xf0]  ;;  %v5351_v63 = vld [vmem:[#allocation5 + $0x54c] sm:$0xf] }
  0xac   :  { %2593 = vmatpush.bf16.msrb.mxu2 %v3757_v11  ;;  %v4704_v11 = vld [vmem:[#allocation5 + $0x8c8] sm:$0xf]  ;;  %v4233_v27 = vor.u32 %v5344_v14, %v4230_v15  ;;  %v4118_v14 = vld [vmem:[#allocation5 + $0x44c] sm:$0xf0] }
  0xad   :  { %2568 = vmatpush.bf16.msra.mxu3 %v4845_v17  ;;  %v3617_v17 = vor.u32 %v5190_v6, %v3614_v7  ;;  %v4705_v26 = vor.u32 %v5466_v12, %v4704_v11  ;;  %v5498_v6 = vld [vmem:[#allocation5 + $0x9e4] sm:$0xf]  ;;  %v4846_v7 = vld [vmem:[#allocation5 + $0x9fc] sm:$0xf0]  ;;  %v5916_v11 = vld [vmem:[#allocation7] sm:$0x7f]  ;;  %v4373_v12 = vor.u32 %v5379_v2, %v4370_v3 }
  0xae   :  { %2606 = vmatpush.bf16.msra.mxu0 %v3981_v22  ;;  %v3838_v22 = vld [vmem:[#allocation5 + $0x21c] sm:$0xf0]  ;;  %v4849_v15 = vor.u32 %v5498_v6, %v4846_v7  ;;  %v4258_v0 = vld [vmem:[#allocation5 + $0x564] sm:$0xf0]  ;;  %v3788_v3 = vld [vmem:[#allocation5 + $0x198] sm:$0xf] }
  0xaf   :  { %2556 = vmatpush.bf16.msra.mxu1 %v4593_v28  ;;  %v5456_v28 = vld [vmem:[#allocation5 + $0x894] sm:$0xf]  ;;  %v4930_v6 = vld [vmem:[#allocation5 + $0xaa4] sm:$0xf0] }
  0xb0   :  { %2594 = vmatpush.bf16.msrb.mxu2 %v3729_v25  ;;  %v3586_v25 = vld [vmem:[#allocation5 + $0x24] sm:$0xf0]  ;;  %v4681_v41 = vor.u32 %v5456_v28, %v4678_v29  ;;  %v5309_v28 = vld [vmem:[#allocation5 + $0x3fc] sm:$0xf]  ;;  %v4090_v29 = vld [vmem:[#allocation5 + $0x414] sm:$0xf0] }
  0xb1   :  { %2569 = vmatpush.bf16.msra.mxu3 %v4817_v31  ;;  %v3841_v31 = vor.u32 %v5246_v21, %v3838_v22  ;;  %v3589_v36 = vor.u32 %v5183_v24, %v3586_v25  ;;  %v5491_v21 = vld [vmem:[#allocation5 + $0x9ac] sm:$0xf]  ;;  %v4818_v22 = vld [vmem:[#allocation5 + $0x9c4] sm:$0xf0]  ;;  %v5428_v25 = vld [vmem:[#allocation5 + $0x7b4] sm:$0xf] }
  0xb2   :  { %2607 = vmatpush.bf16.msra.mxu0 %v3953_v35  ;;  %v5393_v35 = vld [vmem:[#allocation5 + $0x69c] sm:$0xf] }
  0xb3   :  { %2557 = vmatpush.bf16.msra.mxu1 %v4565_v42  ;;  %v5512_v42 = vld [vmem:[#allocation5 + $0xa54] sm:$0xf]  ;;  %v4429_v48 = vor.u32 %v5393_v35, %v4426_v38  ;;  %v4790_v38 = vld [vmem:[#allocation5 + $0x98c] sm:$0xf0] }
  0xb4   :  { %2595 = vmatpush.bf16.msrb.mxu2 %v3701_v39  ;;  %v5239_v39 = vld [vmem:[#allocation5 + $0x1cc] sm:$0xf] }
  0xb5   :  { %2570 = vmatpush.bf16.msra.mxu3 %v4789_v46  ;;  %4948 = vmatmul.msk.bf16.vlgmr.msrb.gmra.mxu0 %vm2315_vm0, %v5888_v45  ;;  %v5449_v46 = vld [vmem:[#allocation5 + $0x85c] sm:$0xf] }
  0xb6   :  { %2608 = vmatpush.bf16.msra.mxu0 %v3925_v49  ;;  %v3813_v49 = vor.u32 %v5239_v39, %v3810_v40  ;;  %v4093_v40 = vor.u32 %v5309_v28, %v4090_v29  ;;  %v5348_v28 = vld [vmem:[#allocation5 + $0x530] sm:$0xf0] }
  0xb7   :  { %2558 = vmatpush.bf16.msra.mxu1 %v4537_v56  ;;  %v4653_v56 = vor.u32 %v5449_v46, %v4650_v47  ;;  %v4062_v46 = vld [vmem:[#allocation5 + $0x3dc] sm:$0xf0] }
  0xb8   :  { %2596 = vmatpush.bf16.msrb.mxu2 %v3673_v52  ;;  %v4905_v52 = vor.u32 %v5512_v42, %v4902_v43  ;;  %v4538_v42 = vld [vmem:[#allocation5 + $0x794] sm:$0xf0] }
  0xb9   :  { %2571 = vmatpush.bf16.msra.mxu3 %v4761_v59  ;;  %v4177_v59 = vor.u32 %v5330_v50, %v4174_v51  ;;  %v4286_v50 = vld [vmem:[#allocation5 + $0x59c] sm:$0xf0] }
  0xba   :  { %2609 = vmatpush.bf16.msra.mxu0 %v3897_v62  ;;  %v4401_v62 = vor.u32 %v5386_v54, %v4398_v55  ;;  %v5477_v54 = vld [vmem:[#allocation5 + $0x93c] sm:$0xf]  ;;  %v4762_v55 = vld [vmem:[#allocation5 + $0x954] sm:$0xf0] }
  0xbb   :  { %2559 = vmatpush.bf16.msra.mxu1 %v4509_v5  ;;  %v4625_v5 = vor.u32 %v5442_v60, %v4622_v61  ;;  %v5295_v60 = vld [vmem:[#allocation5 + $0x38c] sm:$0xf]  ;;  %v4765_v2 = vor.u32 %v5477_v54, %v4762_v55 }
  0xbc   :  { %2597 = vmatpush.bf16.msrb.mxu2 %v3645_v1  ;;  %v4877_v1 = vor.u32 %v5505_v57, %v4874_v58  ;;  %v5414_v58 = vld [vmem:[#allocation5 + $0x744] sm:$0xf] }
  0xbd   :  { %2572 = vmatpush.bf16.msra.mxu3 %v4733_v9  ;;  %v5435_v9 = vld [vmem:[#allocation5 + $0x7ec] sm:$0xf] }
  0xbe   :  { %2610 = vmatpush.bf16.msra.mxu0 %v3869_v13  ;;  %v5316_v13 = vld [vmem:[#allocation5 + $0x434] sm:$0xf]  ;;  %v4597_v20 = vor.u32 %v5435_v9, %v4594_v10  ;;  %v2328_v34 = vpop.f32.mrf.mxu0  ;;  %v5470_v10 = vld [vmem:[#allocation5 + $0x904] sm:$0xf] }
  0xbf   :  { %2560 = vmatpush.bf16.msra.mxu1 %v4481_v23  ;;  %v537_v23 = vperm.slane %v5916_v11, 0  ;;  %v4121_v24 = vor.u32 %v5316_v13, %v4118_v14  ;;  %v2341_v51 = vpop.f32.mrf.mxu1  ;;  %v5236_v9 = vld [vmem:[#allocation5 + $0x1b0] sm:$0xf0]  ;;  %v5407_v14 = vld [vmem:[#allocation5 + $0x70c] sm:$0xf] }
  0xc0   :  { %2598 = vmatpush.bf16.msrb.mxu2 %v3617_v17  ;;  %v4342_v17 = vld [vmem:[#allocation5 + $0x60c] sm:$0xf0] }
  0xc1   :  { %2573 = vmatpush.bf16.msra.mxu3 %v4705_v26  ;;  %v4566_v26 = vld [vmem:[#allocation5 + $0x7cc] sm:$0xf0]  ;;  %v2329_v39 = vadd.f32 %v2328_v34, %v537_v23 }
  0xc2   :  { %2611 = vmatpush.bf16.msra.mxu0 %v3841_v31  ;;  %2561 = vmatmul.bf16.vlgmr.msra.gmra.mxu1 %v5892_v33  ;;  %v5365_v31 = vld [vmem:[#allocation5 + $0x5bc] sm:$0xf]  ;;  %v4569_v35 = vor.u32 %v5428_v25, %v4566_v26  ;;  %v3789_v25 = vor.u32 %v5236_v9, %v3788_v3  ;;  %v4404_v3 = vld [vmem:[#allocation5 + $0x668] sm:$0xf] }
  0xc3   :  { %2618 = vmatpush.bf16.msrb.mxu1 %v4233_v27  ;;  %v4345_v27 = vor.u32 %v5372_v16, %v4342_v17  ;;  %v4317_v43 = vor.u32 %v5365_v31, %v4314_v32  ;;  %v4261_v17 = vor.u32 %v5351_v63, %v4258_v0  ;;  %v3760_v31 = vld [vmem:[#allocation5 + $0x160] sm:$0xf]  ;;  %v5229_v32 = vld [vmem:[#allocation5 + $0x178] sm:$0xf0]  ;;  %v3704_v63 = vld [vmem:[#allocation5 + $0xf0] sm:$0xf] }
  0xc4   :  { %2599 = vmatpush.bf16.msrb.mxu2 %v3589_v36  ;;  %2574 = vmatmul.bf16.vlgmr.msra.gmra.mxu3 %v5894_v37  ;;  %v5484_v36 = vld [vmem:[#allocation5 + $0x974] sm:$0xf]  ;;  %v5215_v0 = vld [vmem:[#allocation5 + $0x108] sm:$0xf0] }
  0xc5   :  { %2631 = vmatpush.bf16.msrb.mxu3 %v4457_v30  ;;  %v4821_v30 = vor.u32 %v5491_v21, %v4818_v22  ;;  %v4012_v21 = vld [vmem:[#allocation5 + $0x358] sm:$0xf]  ;;  %v5292_v22 = vld [vmem:[#allocation5 + $0x370] sm:$0xf0]  ;;  %v3705_v9 = vor.u32 %v5215_v0, %v3704_v63 }
  0xc6   :  { %2612 = vmatpush.bf16.msra.mxu0 %v3813_v49  ;;  %v2354_v47 = vpop.f32.mrf.mxu2  ;;  %v5358_v49 = vld [vmem:[#allocation5 + $0x584] sm:$0xf]  ;;  %v2330_v7 = vpop.f32.mrf.mxu0  ;;  %v4013_v34 = vor.u32 %v5292_v22, %v4012_v21  ;;  %v4376_v22 = vld [vmem:[#allocation5 + $0x630] sm:$0xf] }
  0xc7   :  { %2619 = vmatpush.bf16.msrb.mxu1 %v4205_v44  ;;  %2600 = vmatmul.bf16.vlgmr.msrb.gmra.mxu2 %v5879_v4  ;;  %v5302_v44 = vld [vmem:[#allocation5 + $0x3c4] sm:$0xf]  ;;  %v4289_v61 = vor.u32 %v5358_v49, %v4286_v50  ;;  %v2367_v16 = vpop.f32.mrf.mxu3  ;;  %v2343_v29 = vpop.f32.mrf.mxu1  ;;  %v3928_v7 = vld [vmem:[#allocation5 + $0x2b0] sm:$0xf] }
  0xc8   :  { %2644 = vmatpush.bf16.msra.mxu2 %v4681_v41  ;;  %v5421_v41 = vld [vmem:[#allocation5 + $0x77c] sm:$0xf]  ;;  %v4065_v57 = vor.u32 %v5302_v44, %v4062_v46  ;;  %v4208_v44 = vld [vmem:[#allocation5 + $0x4e0] sm:$0xf]  ;;  %v5222_v49 = vld [vmem:[#allocation5 + $0x140] sm:$0xf0] }
  0xc9   :  { %2632 = vmatpush.bf16.msrb.mxu3 %v4429_v48  ;;  %2613 = vmatmul.bf16.vlgmr.msra.gmra.mxu0 %v5882_v18  ;;  %v4793_v48 = vor.u32 %v5484_v36, %v4790_v38  ;;  %v4706_v36 = vld [vmem:[#allocation5 + $0x8e4] sm:$0xf0]  ;;  %v4460_v38 = vld [vmem:[#allocation5 + $0x6d8] sm:$0xf]  ;;  %v5341_v46 = vld [vmem:[#allocation5 + $0x4f8] sm:$0xf0] }
  0xca   :  { %2657 = vmatpush.bf16.msrb.mxu0 %v4905_v52  ;;  %v4541_v52 = vor.u32 %v5421_v41, %v4538_v42  ;;  %v3984_v41 = vld [vmem:[#allocation5 + $0x320] sm:$0xf]  ;;  %v5285_v42 = vld [vmem:[#allocation5 + $0x338] sm:$0xf0]  ;;  %v4209_v55 = vor.u32 %v5341_v46, %v4208_v44 }
  0xcb   :  { %2620 = vmatpush.bf16.msrb.mxu1 %v4177_v59  ;;  %v4510_v59 = vld [vmem:[#allocation5 + $0x75c] sm:$0xf0]  ;;  %v5257_v44 = vld [vmem:[#allocation5 + $0x258] sm:$0xf0] }
  0xcc   :  { %2645 = vmatpush.bf16.msra.mxu2 %v4653_v56  ;;  %v2342_v56 = vadd.f32 %v2341_v51, %v2329_v39  ;;  %v3985_v51 = vor.u32 %v5285_v42, %v3984_v41  ;;  %v5376_v42 = vld [vmem:[#allocation5 + $0x610] sm:$0xf0] }
  0xcd   :  { %2633 = vmatpush.bf16.msrb.mxu3 %v4401_v62  ;;  %v4034_v62 = vld [vmem:[#allocation5 + $0x3a4] sm:$0xf0] }
  0xce   :  { %2658 = vmatpush.bf16.msrb.mxu0 %v4877_v1  ;;  %v2355_v1 = vadd.f32 %v2354_v47, %v2342_v56  ;;  %v4037_v13 = vor.u32 %v5295_v60, %v4034_v62  ;;  %v5397_v56 = vld [vmem:[#allocation5 + $0x6b8] sm:$0xf0]  ;;  %v5334_v62 = vld [vmem:[#allocation5 + $0x4c0] sm:$0xf0] }
  0xcf   :  { %2621 = vmatpush.bf16.msrb.mxu1 %v4149_v8  ;;  %v4513_v8 = vor.u32 %v5414_v58, %v4510_v59  ;;  %v2369_v54 = vpop.f32.mrf.mxu3  ;;  %v5278_v58 = vld [vmem:[#allocation5 + $0x300] sm:$0xf0] }
  0xd0   :  { %2646 = vmatpush.bf16.msra.mxu2 %v4625_v5  ;;  %v5519_v5 = vld [vmem:[#allocation5 + $0xa8c] sm:$0xf]  ;;  %v5919_v23 = vadd.f32 %v2367_v16, %v2355_v1 }
  0xd1   :  { %2634 = vmatpush.bf16.msrb.mxu3 %v4373_v12  ;;  %v4734_v12 = vld [vmem:[#allocation5 + $0x91c] sm:$0xf0] }
  0xd2   :  { %2659 = vmatpush.bf16.msrb.mxu0 %v4849_v15  ;;  %v4482_v15 = vld [vmem:[#allocation5 + $0x724] sm:$0xf0]  ;;  %v4737_v26 = vor.u32 %v5470_v10, %v4734_v12  ;;  %v4152_v10 = vld [vmem:[#allocation5 + $0x470] sm:$0xf]  ;;  %v5327_v12 = vld [vmem:[#allocation5 + $0x488] sm:$0xf0] }
  0xd3   :  { %2622 = vmatpush.bf16.msrb.mxu1 %v4121_v24  ;;  %v2356_v24 = vpop.f32.mrf.mxu2 }
  0xd4   :  { %2647 = vmatpush.bf16.msra.mxu2 %v4597_v20  ;;  %v4933_v20 = vor.u32 %v5519_v5, %v4930_v6  ;;  %v5390_v6 = vld [vmem:[#allocation5 + $0x680] sm:$0xf0]  ;;  %v4153_v24 = vor.u32 %v5327_v12, %v4152_v10  ;;  %v5460_v10 = vld [vmem:[#allocation5 + $0x8b0] sm:$0xf0]  ;;  %v4292_v12 = vld [vmem:[#allocation5 + $0x588] sm:$0xf] }
  0xd5   :  { %2635 = vmatpush.bf16.msrb.mxu3 %v4345_v27  ;;  %v4236_v27 = vld [vmem:[#allocation5 + $0x518] sm:$0xf]  ;;  %v4405_v16 = vor.u32 %v5390_v6, %v4404_v3  ;;  %v5187_v6 = vld [vmem:[#allocation5 + $0x28] sm:$0xf0] }
  0xd6   :  { %2660 = vmatpush.bf16.msrb.mxu0 %v4821_v30  ;;  %v4485_v30 = vor.u32 %v5407_v14, %v4482_v15  ;;  %v4237_v39 = vor.u32 %v5348_v28, %v4236_v27  ;;  %v3676_v14 = vld [vmem:[#allocation5 + $0xb8] sm:$0xf]  ;;  %v5208_v15 = vld [vmem:[#allocation5 + $0xd0] sm:$0xf0] }
  0xd7   :  { %2623 = vmatpush.bf16.msrb.mxu1 %v4093_v40  ;;  %v5404_v40 = vld [vmem:[#allocation5 + $0x6f0] sm:$0xf0]  ;;  %v3677_v29 = vor.u32 %v5208_v15, %v3676_v14  ;;  %v3816_v15 = vld [vmem:[#allocation5 + $0x1d0] sm:$0xf] }
  0xd8   :  { %2648 = vmatpush.bf16.msra.mxu2 %v4569_v35  ;;  %v5463_v35 = vld [vmem:[#allocation5 + $0x8cc] sm:$0xf]  ;;  %v4461_v50 = vor.u32 %v5404_v40, %v4460_v38  ;;  %v5264_v27 = vld [vmem:[#allocation5 + $0x290] sm:$0xf0]  ;;  %v538_v40 = vperm.slane %v5916_v11, 1 }
  0xd9   :  { %2636 = vmatpush.bf16.msrb.mxu3 %v4317_v43  ;;  %v3761_v43 = vor.u32 %v5229_v32, %v3760_v31  ;;  %v4709_v47 = vor.u32 %v5463_v35, %v4706_v36  ;;  %v4124_v31 = vld [vmem:[#allocation5 + $0x438] sm:$0xf]  ;;  %v5320_v32 = vld [vmem:[#allocation5 + $0x450] sm:$0xf0]  ;;  %v5201_v35 = vld [vmem:[#allocation5 + $0x98] sm:$0xf0] }
  0xda   :  { %2661 = vmatpush.bf16.msrb.mxu0 %v4793_v48  ;;  %v3732_v48 = vld [vmem:[#allocation5 + $0x128] sm:$0xf]  ;;  %v4125_v41 = vor.u32 %v5320_v32, %v4124_v31  ;;  %v4656_v31 = vld [vmem:[#allocation5 + $0x860] sm:$0xf]  ;;  %v5453_v32 = vld [vmem:[#allocation5 + $0x878] sm:$0xf0] }
  0xdb   :  { %2624 = vmatpush.bf16.msrb.mxu1 %v4065_v57  ;;  %v3956_v57 = vld [vmem:[#allocation5 + $0x2e8] sm:$0xf]  ;;  %v2406_v59 = vpop.f32.mrf.mxu2  ;;  %v3733_v60 = vor.u32 %v5222_v49, %v3732_v48  ;;  %v5313_v48 = vld [vmem:[#allocation5 + $0x418] sm:$0xf0] }
  0xdc   :  { %2649 = vmatpush.bf16.msra.mxu2 %v4541_v52  ;;  %v4432_v52 = vld [vmem:[#allocation5 + $0x6a0] sm:$0xf]  ;;  %v3620_v49 = vld [vmem:[#allocation5 + $0x48] sm:$0xf] }
  0xdd   :  { %2637 = vmatpush.bf16.msrb.mxu3 %v4289_v61  ;;  %v4180_v61 = vld [vmem:[#allocation5 + $0x4a8] sm:$0xf]  ;;  %v4433_v1 = vor.u32 %v5397_v56, %v4432_v52  ;;  %v4320_v56 = vld [vmem:[#allocation5 + $0x5c0] sm:$0xf] }
  0xde   :  { %2662 = vmatpush.bf16.msrb.mxu0 %v4765_v2  ;;  %v3957_v2 = vor.u32 %v5278_v58, %v3956_v57  ;;  %v4181_v5 = vor.u32 %v5334_v62, %v4180_v61  ;;  %v3844_v61 = vld [vmem:[#allocation5 + $0x208] sm:$0xf]  ;;  %v5250_v62 = vld [vmem:[#allocation5 + $0x220] sm:$0xf0] }
  0xdf   :  { %2625 = vmatpush.bf16.msrb.mxu1 %v4037_v13  ;;  %v2380_v13 = vpop.f32.mrf.mxu0  ;;  %v2393_v21 = vpop.f32.mrf.mxu1 }
  0xe0   :  { %2650 = vmatpush.bf16.msra.mxu2 %v4513_v8  ;;  %v5271_v8 = vld [vmem:[#allocation5 + $0x2c8] sm:$0xf0] }
  0xe1   :  { %2638 = vmatpush.bf16.msrb.mxu3 %v4261_v17  ;;  %v2381_v17 = vadd.f32 %v2380_v13, %v5919_v23  ;;  %v5362_v13 = vld [vmem:[#allocation5 + $0x5a0] sm:$0xf0] }
  0xe2   :  { %2663 = vmatpush.bf16.msrb.mxu0 %v4737_v26  ;;  %2626 = vmatmul.bf16.vlgmr.msrb.gmra.mxu1 %v5876_v53  ;;  %v3900_v26 = vld [vmem:[#allocation5 + $0x278] sm:$0xf] }
  0xe3   :  { %2677 = vmatpush.bf16.msra.mxu1 %v4933_v20  ;;  %v3929_v20 = vor.u32 %v5271_v8, %v3928_v7  ;;  %v2408_v28 = vpop.f32.mrf.mxu2  ;;  %v3901_v38 = vor.u32 %v5264_v27, %v3900_v26  ;;  %v4684_v7 = vld [vmem:[#allocation5 + $0x898] sm:$0xf]  ;;  %v4936_v26 = vld [vmem:[#allocation5 + $0xa90] sm:$0xf]  ;;  %v5523_v27 = vld [vmem:[#allocation5 + $0xaa8] sm:$0xf0] }
  0xe4   :  { %2651 = vmatpush.bf16.msra.mxu2 %v4485_v30  ;;  %2639 = vmatmul.bf16.vlgmr.msrb.gmra.mxu3 %v5884_v19  ;;  %v2394_v30 = vadd.f32 %v2393_v21, %v2381_v17  ;;  %v4040_v17 = vld [vmem:[#allocation5 + $0x390] sm:$0xf]  ;;  %v5299_v21 = vld [vmem:[#allocation5 + $0x3a8] sm:$0xf0] }
  0xe5   :  { %2683 = vmatpush.bf16.msra.mxu3 %v3789_v25  ;;  %v5383_v25 = vld [vmem:[#allocation5 + $0x648] sm:$0xf0] }
  0xe6   :  { %2664 = vmatpush.bf16.msrb.mxu0 %v4709_v47  ;;  %v4377_v36 = vor.u32 %v5383_v25, %v4376_v22  ;;  %v5926_v23 = vadd.f32 %v2406_v59, %v2394_v30  ;;  %v4096_v47 = vld [vmem:[#allocation5 + $0x400] sm:$0xf]  ;;  %v4908_v22 = vld [vmem:[#allocation5 + $0xa58] sm:$0xf]  ;;  %v4685_v25 = vor.u32 %v5460_v10, %v4684_v7  ;;  %v3734_v7 = vld [vmem:[#allocation5 + $0x144] sm:$0xf0] }
  0xe7   :  { %2696 = vmatpush.bf16.msrb.mxu1 %v4013_v34  ;;  %2652 = vmatmul.bf16.vlgmr.msra.gmra.mxu2 %v5892_v33  ;;  %v3648_v34 = vld [vmem:[#allocation5 + $0x80] sm:$0xf]  ;;  %v2419_v52 = vpop.f32.mrf.mxu3  ;;  %v2395_v58 = vpop.f32.mrf.mxu1  ;;  %v4097_v59 = vor.u32 %v5313_v48, %v4096_v47  ;;  %v5509_v48 = vld [vmem:[#allocation5 + $0xa38] sm:$0xf0] }
  0xe8   :  { %2709 = vmatpush.bf16.msrb.mxu2 %v4237_v39  ;;  %v4348_v39 = vld [vmem:[#allocation5 + $0x5f8] sm:$0xf]  ;;  %v3649_v46 = vor.u32 %v5201_v35, %v3648_v34  ;;  %v2420_v57 = vadd.f32 %v2419_v52, %v538_v40  ;;  %v4041_v34 = vor.u32 %v5299_v21, %v4040_v17  ;;  %v4880_v47 = vld [vmem:[#allocation5 + $0xa20] sm:$0xf]  ;;  %v5282_v58 = vld [vmem:[#allocation5 + $0x324] sm:$0xf] }
  0xe9   :  { %2684 = vmatpush.bf16.msra.mxu3 %v3761_v43  ;;  %2665 = vmatmul.bf16.vlgmr.msrb.gmra.mxu0 %v5894_v37  ;;  %v3872_v43 = vld [vmem:[#allocation5 + $0x240] sm:$0xf]  ;;  %v4349_v54 = vor.u32 %v5376_v42, %v4348_v39  ;;  %v5233_v39 = vld [vmem:[#allocation5 + $0x19c] sm:$0xf]  ;;  %v3790_v42 = vld [vmem:[#allocation5 + $0x1b4] sm:$0xf0] }
  0xea   :  { %2722 = vmatpush.bf16.msra.mxu0 %v4461_v50  ;;  %v5194_v50 = vld [vmem:[#allocation5 + $0x60] sm:$0xf0]  ;;  %v3793_v52 = vor.u32 %v5233_v39, %v3790_v42  ;;  %v5212_v21 = vld [vmem:[#allocation5 + $0xf4] sm:$0xf]  ;;  %v3902_v42 = vld [vmem:[#allocation5 + $0x294] sm:$0xf0] }
  0xeb   :  { %2697 = vmatpush.bf16.msrb.mxu1 %v3985_v51  ;;  %v2382_v51 = vpop.f32.mrf.mxu0  ;;  %v2432_v63 = vpop.f32.mrf.mxu2  ;;  %v3621_v0 = vor.u32 %v5194_v50, %v3620_v49  ;;  %v4628_v50 = vld [vmem:[#allocation5 + $0x828] sm:$0xf] }
  0xec   :  { %2710 = vmatpush.bf16.msrb.mxu2 %v4209_v55  ;;  %v3873_v55 = vor.u32 %v5257_v44, %v3872_v43  ;;  %v5931_v3 = vadd.f32 %v2432_v63, %v2420_v57  ;;  %v5289_v43 = vld [vmem:[#allocation5 + $0x35c] sm:$0xf]  ;;  %v4014_v44 = vld [vmem:[#allocation5 + $0x374] sm:$0xf0]  ;;  %v5446_v51 = vld [vmem:[#allocation5 + $0x840] sm:$0xf0] }
  0xed   :  { %2685 = vmatpush.bf16.msra.mxu3 %v3733_v60  ;;  %v5369_v60 = vld [vmem:[#allocation5 + $0x5d8] sm:$0xf0]  ;;  %v3762_v57 = vld [vmem:[#allocation5 + $0x17c] sm:$0xf0]  ;;  %v4600_v63 = vld [vmem:[#allocation5 + $0x7f0] sm:$0xf] }
  0xee   :  { %2723 = vmatpush.bf16.msra.mxu0 %v4433_v1  ;;  %v4068_v1 = vld [vmem:[#allocation5 + $0x3c8] sm:$0xf]  ;;  %v4321_v8 = vor.u32 %v5369_v60, %v4320_v56  ;;  %v4881_v56 = vor.u32 %v5509_v48, %v4880_v47  ;;  %v4629_v60 = vor.u32 %v5446_v51, %v4628_v50  ;;  %v5418_v48 = vld [vmem:[#allocation5 + $0x760] sm:$0xf0] }
  0xef   :  { %2698 = vmatpush.bf16.msrb.mxu1 %v3957_v2  ;;  %v5306_v2 = vld [vmem:[#allocation5 + $0x3e0] sm:$0xf0]  ;;  %v2421_v28 = vpop.f32.mrf.mxu3  ;;  %v4516_v47 = vld [vmem:[#allocation5 + $0x748] sm:$0xf] }
  0xf0   :  { %2711 = vmatpush.bf16.msrb.mxu2 %v4181_v5  ;;  %v3592_v5 = vld [vmem:[#allocation5 + $0x10] sm:$0xf]  ;;  %v4069_v14 = vor.u32 %v5306_v2, %v4068_v1 }
  0xf1   :  { %2686 = vmatpush.bf16.msra.mxu3 %v3705_v9  ;;  %v3845_v9 = vor.u32 %v5250_v62, %v3844_v61  ;;  %v4852_v61 = vld [vmem:[#allocation5 + $0x9e8] sm:$0xf]  ;;  %v5502_v62 = vld [vmem:[#allocation5 + $0xa00] sm:$0xf0] }
  0xf2   :  { %2724 = vmatpush.bf16.msra.mxu0 %v4405_v16  ;;  %4949 = vmatmul.msk.bf16.vlgmr.msra.gmra.mxu1 %vm2315_vm0, %v5888_v45  ;;  %v5243_v16 = vld [vmem:[#allocation5 + $0x1e8] sm:$0xf0] }
  0xf3   :  { %2699 = vmatpush.bf16.msrb.mxu1 %v3929_v20  ;;  %v3593_v20 = vor.u32 %v5187_v6, %v3592_v5  ;;  %v3817_v30 = vor.u32 %v5243_v16, %v3816_v15  ;;  %v2434_v40 = vpop.f32.mrf.mxu2  ;;  %v5219_v5 = vld [vmem:[#allocation5 + $0x12c] sm:$0xf]  ;;  %v4853_v6 = vor.u32 %v5502_v62, %v4852_v61  ;;  %v5432_v15 = vld [vmem:[#allocation5 + $0x7d0] sm:$0xf0]  ;;  %v4517_v61 = vor.u32 %v5418_v48, %v4516_v47  ;;  %v4740_v62 = vld [vmem:[#allocation5 + $0x908] sm:$0xf] }
  0xf4   :  { %2712 = vmatpush.bf16.msrb.mxu2 %v4153_v24  ;;  %v5516_v24 = vld [vmem:[#allocation5 + $0xa70] sm:$0xf0]  ;;  %v3737_v17 = vor.u32 %v5219_v5, %v3734_v7  ;;  %v3678_v40 = vld [vmem:[#allocation5 + $0xd4] sm:$0xf0]  ;;  %v5345_v7 = vld [vmem:[#allocation5 + $0x51c] sm:$0xf] }
  0xf5   :  { %2687 = vmatpush.bf16.msra.mxu3 %v3677_v29  ;;  %v4293_v29 = vor.u32 %v5362_v13, %v4292_v12  ;;  %v4909_v35 = vor.u32 %v5516_v24, %v4908_v22  ;;  %v4824_v12 = vld [vmem:[#allocation5 + $0x9b0] sm:$0xf]  ;;  %v5495_v13 = vld [vmem:[#allocation5 + $0x9c8] sm:$0xf0]  ;;  %v4434_v47 = vld [vmem:[#allocation5 + $0x6bc] sm:$0xf0] }
  0xf6   :  { %2725 = vmatpush.bf16.msra.mxu0 %v4377_v36  ;;  %v4264_v36 = vld [vmem:[#allocation5 + $0x550] sm:$0xf]  ;;  %v4825_v24 = vor.u32 %v5495_v13, %v4824_v12  ;;  %v3622_v13 = vld [vmem:[#allocation5 + $0x64] sm:$0xf0] }
  0xf7   :  { %2700 = vmatpush.bf16.msrb.mxu1 %v3901_v38  ;;  %v5355_v38 = vld [vmem:[#allocation5 + $0x568] sm:$0xf0] }
  0xf8   :  { %2713 = vmatpush.bf16.msrb.mxu2 %v4125_v41  ;;  %v4937_v41 = vor.u32 %v5523_v27, %v4936_v26  ;;  %v4265_v49 = vor.u32 %v5355_v38, %v4264_v36  ;;  %v5268_v26 = vld [vmem:[#allocation5 + $0x2b4] sm:$0xf]  ;;  %v3930_v27 = vld [vmem:[#allocation5 + $0x2cc] sm:$0xf0]  ;;  %v5205_v38 = vld [vmem:[#allocation5 + $0xbc] sm:$0xf] }
  0xf9   :  { %2688 = vmatpush.bf16.msra.mxu3 %v3649_v46  ;;  %v4657_v46 = vor.u32 %v5453_v32, %v4656_v31  ;;  %v4544_v31 = vld [vmem:[#allocation5 + $0x780] sm:$0xf]  ;;  %v5425_v32 = vld [vmem:[#allocation5 + $0x798] sm:$0xf0]  ;;  %v3681_v50 = vor.u32 %v5205_v38, %v3678_v40  ;;  %v3818_v38 = vld [vmem:[#allocation5 + $0x1ec] sm:$0xf0] }
  0xfa   :  { %2726 = vmatpush.bf16.msra.mxu0 %v4349_v54  ;;  %v4017_v54 = vor.u32 %v5289_v43, %v4014_v44  ;;  %v4545_v43 = vor.u32 %v5425_v32, %v4544_v31  ;;  %v4768_v44 = vld [vmem:[#allocation5 + $0x940] sm:$0xf]  ;;  %v3594_v31 = vld [vmem:[#allocation5 + $0x2c] sm:$0xf0] }
  0xfb   :  { %2701 = vmatpush.bf16.msrb.mxu1 %v3873_v55  ;;  %v5226_v55 = vld [vmem:[#allocation5 + $0x164] sm:$0xf] }
  0xfc   :  { %2714 = vmatpush.bf16.msrb.mxu2 %v4097_v59  ;;  %v3986_v59 = vld [vmem:[#allocation5 + $0x33c] sm:$0xf0]  ;;  %v3765_v1 = vor.u32 %v5226_v55, %v3762_v57 }
  0xfd   :  { %2689 = vmatpush.bf16.msra.mxu3 %v3621_v0  ;;  %v5439_v0 = vld [vmem:[#allocation5 + $0x808] sm:$0xf0]  ;;  %v3989_v2 = vor.u32 %v5282_v58, %v3986_v59  ;;  %v3650_v58 = vld [vmem:[#allocation5 + $0x9c] sm:$0xf0]  ;;  %v5254_v59 = vld [vmem:[#allocation5 + $0x244] sm:$0xf] }
  0xfe   :  { %2727 = vmatpush.bf16.msra.mxu0 %v4321_v8  ;;  %v5275_v8 = vld [vmem:[#allocation5 + $0x2ec] sm:$0xf]  ;;  %v4601_v10 = vor.u32 %v5439_v0, %v4600_v63  ;;  %v2445_v16 = vpop.f32.mrf.mxu0  ;;  %v5474_v63 = vld [vmem:[#allocation5 + $0x920] sm:$0xf0] }
  0xff   :  { %2702 = vmatpush.bf16.msrb.mxu1 %v3845_v9  ;;  %v3958_v9 = vld [vmem:[#allocation5 + $0x304] sm:$0xf0]  ;;  %v2446_v22 = vadd.f32 %v2445_v16, %v5931_v3  ;;  %v2458_v36 = vpop.f32.mrf.mxu1  ;;  %v4741_v12 = vor.u32 %v5474_v63, %v4740_v62  ;;  %v5324_v63 = vld [vmem:[#allocation5 + $0x474] sm:$0xf] }
 0x100   :  { %2715 = vmatpush.bf16.msrb.mxu2 %v4069_v14  ;;  %v4572_v14 = vld [vmem:[#allocation5 + $0x7b8] sm:$0xf]  ;;  %v4406_v62 = vld [vmem:[#allocation5 + $0x684] sm:$0xf0] }
 0x101   :  { %2690 = vmatpush.bf16.msra.mxu3 %v3593_v20  ;;  %v3961_v20 = vor.u32 %v5275_v8, %v3958_v9  ;;  %v4573_v28 = vor.u32 %v5432_v15, %v4572_v14  ;;  %v2459_v3 = vadd.f32 %v2458_v36, %v2446_v22  ;;  %v4238_v8 = vld [vmem:[#allocation5 + $0x534] sm:$0xf0]  ;;  %v5191_v9 = vld [vmem:[#allocation5 + $0x4c] sm:$0xf]  ;;  %v3846_v15 = vld [vmem:[#allocation5 + $0x224] sm:$0xf0] }
 0x102   :  { %2728 = vmatpush.bf16.msra.mxu0 %v4293_v29  ;;  %v4796_v29 = vld [vmem:[#allocation5 + $0x978] sm:$0xf]  ;;  %v5247_v14 = vld [vmem:[#allocation5 + $0x20c] sm:$0xf]  ;;  %v5401_v22 = vld [vmem:[#allocation5 + $0x6dc] sm:$0xf] }
 0x103   :  { %2703 = vmatpush.bf16.msrb.mxu1 %v3817_v30  ;;  %v5488_v30 = vld [vmem:[#allocation5 + $0x990] sm:$0xf0] }
 0x104   :  { %2716 = vmatpush.bf16.msrb.mxu2 %v4041_v34  ;;  %2691 = vmatmul.bf16.vlgmr.msra.gmra.mxu3 %v5879_v4  ;;  %v4797_v39 = vor.u32 %v5488_v30, %v4796_v29  ;;  %v4210_v29 = vld [vmem:[#allocation5 + $0x4fc] sm:$0xf0]  ;;  %v5184_v30 = vld [vmem:[#allocation5 + $0x14] sm:$0xf] }
 0x105   :  { %2735 = vmatpush.bf16.msrb.mxu3 %v4685_v25  ;;  %v3706_v25 = vld [vmem:[#allocation5 + $0x10c] sm:$0xf0]  ;;  %v5240_v36 = vld [vmem:[#allocation5 + $0x1d4] sm:$0xf]  ;;  %v3597_v48 = vor.u32 %v5184_v30, %v3594_v31  ;;  %v4350_v30 = vld [vmem:[#allocation5 + $0x614] sm:$0xf0] }
 0x106   :  { %2704 = vmatmul.bf16.vlgmr.msrb.gmra.mxu1 %v5882_v18  ;;  %2729 = vmatpush.bf16.msra.mxu0 %v4265_v49  ;;  %v3709_v34 = vor.u32 %v5212_v21, %v3706_v25  ;;  %v2447_v49 = vpop.f32.mrf.mxu0  ;;  %v4241_v21 = vor.u32 %v5345_v7, %v4238_v8  ;;  %v5338_v25 = vld [vmem:[#allocation5 + $0x4e4] sm:$0xf]  ;;  %v4630_v8 = vld [vmem:[#allocation5 + $0x844] sm:$0xf0] }
 0x107   :  { %2748 = vmatpush.bf16.msra.mxu1 %v4909_v35  ;;  %2717 = vmatmul.bf16.vlgmr.msrb.gmra.mxu2 %v5876_v53  ;;  %v3933_v35 = vor.u32 %v5268_v26, %v3930_v27  ;;  %v3625_v27 = vor.u32 %v5191_v9, %v3622_v13  ;;  %v3821_v49 = vor.u32 %v5240_v36, %v3818_v38  ;;  %v5499_v9 = vld [vmem:[#allocation5 + $0x9ec] sm:$0xf]  ;;  %v5380_v13 = vld [vmem:[#allocation5 + $0x634] sm:$0xf]  ;;  %v5310_v31 = vld [vmem:[#allocation5 + $0x404] sm:$0xf] }
 0x108   :  { %2768 = vmatpush.bf16.msra.mxu2 %v4937_v41  ;;  %v5261_v41 = vld [vmem:[#allocation5 + $0x27c] sm:$0xf] }
 0x109   :  { %2736 = vmatpush.bf16.msrb.mxu3 %v4657_v46  ;;  %2730 = vmatmul.bf16.vlgmr.msra.gmra.mxu0 %v5884_v19  ;;  %v5481_v46 = vld [vmem:[#allocation5 + $0x958] sm:$0xf0]  ;;  %v3905_v51 = vor.u32 %v5261_v41, %v3902_v42  ;;  %v4686_v41 = vld [vmem:[#allocation5 + $0x8b4] sm:$0xf0] }
 0x10a   :  { %2774 = vmatpush.bf16.msrb.mxu0 %v3793_v52  ;;  %v2471_v52 = vpop.f32.mrf.mxu3  ;;  %v2484_v57 = vpop.f32.mrf.mxu2  ;;  %v5513_v42 = vld [vmem:[#allocation5 + $0xa5c] sm:$0xf] }
 0x10b   :  { %2749 = vmatpush.bf16.msra.mxu1 %v4881_v56  ;;  %v2472_v55 = vadd.f32 %v2471_v52, %v2459_v3  ;;  %v4769_v56 = vor.u32 %v5481_v46, %v4768_v44  ;;  %v4213_v44 = vor.u32 %v5338_v25, %v4210_v29  ;;  %v5394_v46 = vld [vmem:[#allocation5 + $0x6a4] sm:$0xf]  ;;  %v5492_v25 = vld [vmem:[#allocation5 + $0x9b4] sm:$0xf]  ;;  %v5373_v29 = vld [vmem:[#allocation5 + $0x5fc] sm:$0xf] }
 0x10c   :  { %2787 = vmatpush.bf16.msrb.mxu2 %v4017_v54  ;;  %v5198_v54 = vld [vmem:[#allocation5 + $0x84] sm:$0xf] }
 0x10d   :  { %2737 = vmatpush.bf16.msrb.mxu3 %v4629_v60  ;;  %v3874_v60 = vld [vmem:[#allocation5 + $0x25c] sm:$0xf0]  ;;  %v2485_v0 = vadd.f32 %v2484_v57, %v2472_v55  ;;  %v3653_v5 = vor.u32 %v5198_v54, %v3650_v58  ;;  %v5450_v55 = vld [vmem:[#allocation5 + $0x864] sm:$0xf] }
 0x10e   :  { %2775 = vmatpush.bf16.msrb.mxu0 %v3765_v1  ;;  %v4488_v1 = vld [vmem:[#allocation5 + $0x710] sm:$0xf]  ;;  %v2497_v26 = vpop.f32.mrf.mxu0  ;;  %v4658_v57 = vld [vmem:[#allocation5 + $0x87c] sm:$0xf0]  ;;  %v5506_v58 = vld [vmem:[#allocation5 + $0xa24] sm:$0xf] }
 0x10f   :  { %2750 = vmatpush.bf16.msra.mxu1 %v4853_v6  ;;  %v3877_v6 = vor.u32 %v5254_v59, %v3874_v60  ;;  %v4882_v59 = vld [vmem:[#allocation5 + $0xa3c] sm:$0xf0] }
 0x110   :  { %2788 = vmatpush.bf16.msrb.mxu2 %v3989_v2  ;;  %v5411_v2 = vld [vmem:[#allocation5 + $0x728] sm:$0xf0] }
 0x111   :  { %2738 = vmatpush.bf16.msrb.mxu3 %v4601_v10  ;;  %v2460_v10 = vpop.f32.mrf.mxu1  ;;  %v4489_v16 = vor.u32 %v5411_v2, %v4488_v1  ;;  %v4661_v2 = vor.u32 %v5450_v55, %v4658_v57  ;;  %v5478_v57 = vld [vmem:[#allocation5 + $0x944] sm:$0xf] }
 0x112   :  { %2776 = vmatpush.bf16.msrb.mxu0 %v3737_v17  ;;  %v4712_v17 = vld [vmem:[#allocation5 + $0x8d0] sm:$0xf]  ;;  %v2473_v32 = vpop.f32.mrf.mxu3  ;;  %v2486_v3 = vpop.f32.mrf.mxu2  ;;  %v4854_v10 = vld [vmem:[#allocation5 + $0xa04] sm:$0xf0] }
 0x113   :  { %2751 = vmatpush.bf16.msra.mxu1 %v4825_v24  ;;  %v4462_v24 = vld [vmem:[#allocation5 + $0x6f4] sm:$0xf0]  ;;  %v4098_v32 = vld [vmem:[#allocation5 + $0x41c] sm:$0xf0] }
 0x114   :  { %2789 = vmatpush.bf16.msrb.mxu2 %v3961_v20  ;;  %v5467_v20 = vld [vmem:[#allocation5 + $0x8e8] sm:$0xf0]  ;;  %v4465_v40 = vor.u32 %v5401_v22, %v4462_v24  ;;  %v4602_v22 = vld [vmem:[#allocation5 + $0x80c] sm:$0xf0] }
 0x115   :  { %2739 = vmatpush.bf16.msrb.mxu3 %v4573_v28  ;;  %v3849_v28 = vor.u32 %v5247_v14, %v3846_v15  ;;  %v4378_v14 = vld [vmem:[#allocation5 + $0x64c] sm:$0xf0]  ;;  %v5317_v15 = vld [vmem:[#allocation5 + $0x43c] sm:$0xf] }
 0x116   :  { %2777 = vmatpush.bf16.msrb.mxu0 %v3709_v34  ;;  %v5940_v34 = vadd.f32 %v2497_v26, %v2485_v0  ;;  %v4154_v0 = vld [vmem:[#allocation5 + $0x48c] sm:$0xf0]  ;;  %v2499_v1 = vpop.f32.mrf.mxu0  ;;  %v4381_v24 = vor.u32 %v5380_v13, %v4378_v14  ;;  %v4518_v14 = vld [vmem:[#allocation5 + $0x764] sm:$0xf0] }
 0x117   :  { %2752 = vmatpush.bf16.msra.mxu1 %v4797_v39  ;;  %4950 = vmatmul.msk.bf16.vlgmr.msra.gmra.mxu2 %vm2315_vm0, %v5888_v45  ;;  %v5457_v39 = vld [vmem:[#allocation5 + $0x89c] sm:$0xf]  ;;  %v4826_v26 = vld [vmem:[#allocation5 + $0x9cc] sm:$0xf0] }
 0x118   :  { %2790 = vmatpush.bf16.msrb.mxu2 %v3933_v35  ;;  %v4713_v35 = vor.u32 %v5467_v20, %v4712_v17  ;;  %v4689_v52 = vor.u32 %v5457_v39, %v4686_v41  ;;  %v4857_v20 = vor.u32 %v5499_v9, %v4854_v10  ;;  %v4829_v38 = vor.u32 %v5492_v25, %v4826_v26  ;;  %v5429_v39 = vld [vmem:[#allocation5 + $0x7bc] sm:$0xf]  ;;  %v4574_v41 = vld [vmem:[#allocation5 + $0x7d4] sm:$0xf0]  ;;  %v4938_v9 = vld [vmem:[#allocation5 + $0xaac] sm:$0xf0] }
 0x119   :  { %2740 = vmatpush.bf16.msrb.mxu3 %v4545_v43  ;;  %v4910_v43 = vld [vmem:[#allocation5 + $0xa74] sm:$0xf0]  ;;  %v5237_v26 = vld [vmem:[#allocation5 + $0x1b8] sm:$0xf0] }
 0x11a   :  { %2778 = vmatpush.bf16.msrb.mxu0 %v3681_v50  ;;  %v5331_v50 = vld [vmem:[#allocation5 + $0x4ac] sm:$0xf]  ;;  %v4913_v54 = vor.u32 %v5513_v42, %v4910_v43  ;;  %v5485_v42 = vld [vmem:[#allocation5 + $0x97c] sm:$0xf]  ;;  %v4798_v43 = vld [vmem:[#allocation5 + $0x994] sm:$0xf0] }
 0x11b   :  { %2753 = vmatpush.bf16.msra.mxu1 %v4769_v56  ;;  %v4437_v56 = vor.u32 %v5394_v46, %v4434_v47  ;;  %v5366_v46 = vld [vmem:[#allocation5 + $0x5c4] sm:$0xf]  ;;  %v4322_v47 = vld [vmem:[#allocation5 + $0x5dc] sm:$0xf0] }
 0x11c   :  { %2791 = vmatpush.bf16.msrb.mxu2 %v3905_v51  ;;  %v4182_v51 = vld [vmem:[#allocation5 + $0x4c4] sm:$0xf0]  ;;  %v4325_v55 = vor.u32 %v5366_v46, %v4322_v47  ;;  %v5230_v46 = vld [vmem:[#allocation5 + $0x180] sm:$0xf0] }
 0x11d   :  { %2741 = vmatpush.bf16.msrb.mxu3 %v4517_v61  ;;  %v4185_v60 = vor.u32 %v5331_v50, %v4182_v51  ;;  %v5387_v61 = vld [vmem:[#allocation5 + $0x66c] sm:$0xf]  ;;  %v4577_v50 = vor.u32 %v5429_v39, %v4574_v41  ;;  %v4801_v51 = vor.u32 %v5485_v42, %v4798_v43  ;;  %v4714_v39 = vld [vmem:[#allocation5 + $0x8ec] sm:$0xf0]  ;;  %v4468_v43 = vld [vmem:[#allocation5 + $0x6e0] sm:$0xf] }
 0x11e   :  { %2779 = vmatpush.bf16.msrb.mxu0 %v3653_v5  ;;  %v4885_v5 = vor.u32 %v5506_v58, %v4882_v59  ;;  %v4409_v7 = vor.u32 %v5387_v61, %v4406_v62  ;;  %v4770_v58 = vld [vmem:[#allocation5 + $0x95c] sm:$0xf0]  ;;  %v5359_v61 = vld [vmem:[#allocation5 + $0x58c] sm:$0xf]  ;;  %v4294_v62 = vld [vmem:[#allocation5 + $0x5a4] sm:$0xf0] }
 0x11f   :  { %2754 = vmatpush.bf16.msra.mxu1 %v4741_v12  ;;  %v4157_v12 = vor.u32 %v5324_v63, %v4154_v0  ;;  %v2510_v3 = vpop.f32.mrf.mxu1  ;;  %v5296_v63 = vld [vmem:[#allocation5 + $0x394] sm:$0xf]  ;;  %v4042_v0 = vld [vmem:[#allocation5 + $0x3ac] sm:$0xf0]  ;;  %v4297_v13 = vor.u32 %v5359_v61, %v4294_v62  ;;  %v3992_v47 = vld [vmem:[#allocation5 + $0x328] sm:$0xf] }
 0x120   :  { %2792 = vmatpush.bf16.msrb.mxu2 %v3877_v6  ;;  %v5443_v6 = vld [vmem:[#allocation5 + $0x82c] sm:$0xf]  ;;  %v5398_v61 = vld [vmem:[#allocation5 + $0x6c0] sm:$0xf0]  ;;  %v3740_v62 = vld [vmem:[#allocation5 + $0x130] sm:$0xf] }
 0x121   :  { %2742 = vmatpush.bf16.msrb.mxu3 %v4489_v16  ;;  %v4126_v16 = vld [vmem:[#allocation5 + $0x454] sm:$0xf0]  ;;  %v4633_v17 = vor.u32 %v5443_v6, %v4630_v8  ;;  %v4773_v6 = vor.u32 %v5478_v57, %v4770_v58  ;;  %v5520_v8 = vld [vmem:[#allocation5 + $0xa94] sm:$0xf]  ;;  %v5342_v57 = vld [vmem:[#allocation5 + $0x500] sm:$0xf0] }
 0x122   :  { %2780 = vmatpush.bf16.msrb.mxu0 %v3625_v27  ;;  %v539_v27 = vperm.slane %v5916_v11, 2  ;;  %v4101_v11 = vor.u32 %v5310_v31, %v4098_v32  ;;  %v4941_v25 = vor.u32 %v5520_v8, %v4938_v9  ;;  %v5408_v31 = vld [vmem:[#allocation5 + $0x714] sm:$0xf]  ;;  %v4490_v32 = vld [vmem:[#allocation5 + $0x72c] sm:$0xf0] }
 0x123   :  { %2755 = vmatpush.bf16.msra.mxu1 %v4713_v35  ;;  %v2536_v35 = vpop.f32.mrf.mxu0 }
 0x124   :  { %2793 = vmatpush.bf16.msrb.mxu2 %v3849_v28  ;;  %2743 = vmatmul.bf16.vlgmr.msrb.gmra.mxu3 %v5892_v33  ;;  %v4129_v28 = vor.u32 %v5317_v15, %v4126_v16  ;;  %v5471_v15 = vld [vmem:[#allocation5 + $0x90c] sm:$0xf]  ;;  %v4742_v16 = vld [vmem:[#allocation5 + $0x924] sm:$0xf0] }
 0x125   :  { %2800 = vmatpush.bf16.msra.mxu3 %v4241_v21  ;;  %v5436_v21 = vld [vmem:[#allocation5 + $0x7f4] sm:$0xf] }
 0x126   :  { %2781 = vmatpush.bf16.msrb.mxu0 %v3597_v48  ;;  %2756 = vmatmul.bf16.vlgmr.msra.gmra.mxu1 %v5894_v37  ;;  %v4605_v36 = vor.u32 %v5436_v21, %v4602_v22  ;;  %v5303_v48 = vld [vmem:[#allocation5 + $0x3cc] sm:$0xf]  ;;  %v5352_v21 = vld [vmem:[#allocation5 + $0x554] sm:$0xf]  ;;  %v4266_v22 = vld [vmem:[#allocation5 + $0x56c] sm:$0xf0] }
 0x127   :  { %2813 = vmatpush.bf16.msrb.mxu1 %v4465_v40  ;;  %v4353_v40 = vor.u32 %v5373_v29, %v4350_v30  ;;  %v2512_v10 = vpop.f32.mrf.mxu1  ;;  %v4745_v30 = vor.u32 %v5471_v15, %v4742_v16  ;;  %v3936_v15 = vld [vmem:[#allocation5 + $0x2b8] sm:$0xf]  ;;  %v5272_v16 = vld [vmem:[#allocation5 + $0x2d0] sm:$0xf0] }
 0x128   :  { %2794 = vmatpush.bf16.msrb.mxu2 %v3821_v49  ;;  %v4070_v49 = vld [vmem:[#allocation5 + $0x3e4] sm:$0xf0]  ;;  %v4412_v10 = vld [vmem:[#allocation5 + $0x670] sm:$0xf] }
 0x129   :  { %2801 = vmatpush.bf16.msra.mxu3 %v4213_v44  ;;  %2782 = vmatmul.bf16.vlgmr.msrb.gmra.mxu0 %v5879_v4  ;;  %v2511_v44 = vadd.f32 %v2510_v3, %v539_v27  ;;  %v4020_v27 = vld [vmem:[#allocation5 + $0x360] sm:$0xf] }
 0x12a   :  { %2826 = vmatpush.bf16.msra.mxu0 %v4689_v52  ;;  %v5422_v52 = vld [vmem:[#allocation5 + $0x784] sm:$0xf]  ;;  %v4244_v3 = vld [vmem:[#allocation5 + $0x520] sm:$0xf] }
 0x12b   :  { %2814 = vmatpush.bf16.msrb.mxu1 %v4437_v56  ;;  %2795 = vmatmul.bf16.vlgmr.msrb.gmra.mxu2 %v5882_v18  ;;  %v4546_v56 = vld [vmem:[#allocation5 + $0x79c] sm:$0xf0]  ;;  %v2538_v1 = vpop.f32.mrf.mxu0 }
 0x12c   :  { %2839 = vmatpush.bf16.msra.mxu2 %v4913_v54  ;;  %v2523_v54 = vpop.f32.mrf.mxu3  ;;  %v5279_v1 = vld [vmem:[#allocation5 + $0x308] sm:$0xf0] }
 0x12d   :  { %2802 = vmatpush.bf16.msra.mxu3 %v4185_v60  ;;  %v2524_v59 = vadd.f32 %v2523_v54, %v2511_v44  ;;  %v4073_v60 = vor.u32 %v5303_v48, %v4070_v49  ;;  %v5405_v44 = vld [vmem:[#allocation5 + $0x6f8] sm:$0xf0]  ;;  %v5286_v48 = vld [vmem:[#allocation5 + $0x340] sm:$0xf0] }
 0x12e   :  { %2827 = vmatpush.bf16.msra.mxu0 %v4661_v2 }
 0x12f   :  { %2815 = vmatpush.bf16.msrb.mxu1 %v4409_v7  ;;  %v2537_v2 = vadd.f32 %v2536_v35, %v2524_v59  ;;  %v5415_v7 = vld [vmem:[#allocation5 + $0x74c] sm:$0xf]  ;;  %v5464_v35 = vld [vmem:[#allocation5 + $0x8d4] sm:$0xf]  ;;  %v3993_v59 = vor.u32 %v5286_v48, %v3992_v47 }
 0x130   :  { %2840 = vmatpush.bf16.msra.mxu2 %v4885_v5  ;;  %v4549_v5 = vor.u32 %v5422_v52, %v4546_v56  ;;  %v4521_v29 = vor.u32 %v5415_v7, %v4518_v14  ;;  %v4216_v56 = vld [vmem:[#allocation5 + $0x4e8] sm:$0xf]  ;;  %v5335_v7 = vld [vmem:[#allocation5 + $0x4c8] sm:$0xf0]  ;;  %v5216_v14 = vld [vmem:[#allocation5 + $0x110] sm:$0xf0] }
 0x131   :  { %2803 = vmatpush.bf16.msra.mxu3 %v4157_v12  ;;  %v2549_v12 = vpop.f32.mrf.mxu2 }
 0x132   :  { %2828 = vmatpush.bf16.msra.mxu0 %v4633_v17  ;;  %v5947_v17 = vadd.f32 %v2549_v12, %v2537_v2  ;;  %v4217_v2 = vor.u32 %v5342_v57, %v4216_v56  ;;  %v5391_v12 = vld [vmem:[#allocation5 + $0x688] sm:$0xf0] }
 0x133   :  { %2816 = vmatpush.bf16.msrb.mxu1 %v4381_v24  ;;  %v3796_v24 = vld [vmem:[#allocation5 + $0x1a0] sm:$0xf]  ;;  %v5949_v49 = vpop.f32.mrf.mxu0 }
 0x134   :  { %2841 = vmatpush.bf16.msra.mxu2 %v4857_v20  ;;  %v4045_v20 = vor.u32 %v5296_v63, %v4042_v0  ;;  %v3797_v41 = vor.u32 %v5237_v26, %v3796_v24  ;;  %v5223_v63 = vld [vmem:[#allocation5 + $0x148] sm:$0xf0]  ;;  %v3964_v0 = vld [vmem:[#allocation5 + $0x2f0] sm:$0xf]  ;;  %v4413_v24 = vor.u32 %v5391_v12, %v4412_v10 }
 0x135   :  { %2804 = vmatpush.bf16.msra.mxu3 %v4129_v28  ;;  %v5293_v28 = vld [vmem:[#allocation5 + $0x378] sm:$0xf0]  ;;  %v3741_v8 = vor.u32 %v5223_v63, %v3740_v62  ;;  %v3965_v9 = vor.u32 %v5279_v1, %v3964_v0  ;;  %v5370_v63 = vld [vmem:[#allocation5 + $0x5e0] sm:$0xf0]  ;;  %v3628_v0 = vld [vmem:[#allocation5 + $0x50] sm:$0xf] }
 0x136   :  { %2829 = vmatpush.bf16.msra.mxu0 %v4605_v36  ;;  %v2525_v36 = vpop.f32.mrf.mxu3  ;;  %v4021_v42 = vor.u32 %v5293_v28, %v4020_v27  ;;  %v3937_v27 = vor.u32 %v5272_v16, %v3936_v15  ;;  %v4160_v28 = vld [vmem:[#allocation5 + $0x478] sm:$0xf]  ;;  %v5195_v1 = vld [vmem:[#allocation5 + $0x68] sm:$0xf0]  ;;  %v5188_v16 = vld [vmem:[#allocation5 + $0x30] sm:$0xf0] }
 0x137   :  { %2817 = vmatpush.bf16.msrb.mxu1 %v4353_v40  ;;  %v5349_v40 = vld [vmem:[#allocation5 + $0x538] sm:$0xf0]  ;;  %v3908_v36 = vld [vmem:[#allocation5 + $0x280] sm:$0xf]  ;;  %v3629_v10 = vor.u32 %v5195_v1, %v3628_v0  ;;  %v5307_v12 = vld [vmem:[#allocation5 + $0x3e8] sm:$0xf0] }
 0x138   :  { %2842 = vmatpush.bf16.msra.mxu2 %v4829_v38  ;;  %v4269_v38 = vor.u32 %v5352_v21, %v4266_v22  ;;  %v4245_v54 = vor.u32 %v5349_v40, %v4244_v3  ;;  %v3600_v15 = vld [vmem:[#allocation5 + $0x18] sm:$0xf] }
 0x139   :  { %2805 = vmatpush.bf16.msra.mxu3 %v4101_v11  ;;  %v3768_v11 = vld [vmem:[#allocation5 + $0x168] sm:$0xf]  ;;  %v2551_v52 = vpop.f32.mrf.mxu2  ;;  %v4608_v1 = vld [vmem:[#allocation5 + $0x7f8] sm:$0xf] }
 0x13a   :  { %2830 = vmatpush.bf16.msra.mxu0 %v4577_v50  ;;  %v4493_v50 = vor.u32 %v5408_v31, %v4490_v32  ;;  %v3769_v58 = vor.u32 %v5230_v46, %v3768_v11  ;;  %v5384_v31 = vld [vmem:[#allocation5 + $0x650] sm:$0xf0]  ;;  %v3684_v32 = vld [vmem:[#allocation5 + $0xc0] sm:$0xf]  ;;  %v3656_v11 = vld [vmem:[#allocation5 + $0x88] sm:$0xf] }
 0x13b   :  { %2818 = vmatpush.bf16.msrb.mxu1 %v4325_v55  ;;  %v4469_v55 = vor.u32 %v5405_v44, %v4468_v43  ;;  %v5377_v44 = vld [vmem:[#allocation5 + $0x618] sm:$0xf0]  ;;  %v5202_v46 = vld [vmem:[#allocation5 + $0xa0] sm:$0xf0] }
 0x13c   :  { %2843 = vmatpush.bf16.msra.mxu2 %v4801_v51  ;;  %v4717_v51 = vor.u32 %v5464_v35, %v4714_v39  ;;  %v5209_v35 = vld [vmem:[#allocation5 + $0xd8] sm:$0xf0]  ;;  %v3657_v57 = vor.u32 %v5202_v46, %v3656_v11  ;;  %v4888_v46 = vld [vmem:[#allocation5 + $0xa28] sm:$0xf] }
 0x13d   :  { %2806 = vmatpush.bf16.msra.mxu3 %v4073_v60  ;;  %v4440_v60 = vld [vmem:[#allocation5 + $0x6a8] sm:$0xf]  ;;  %v3685_v40 = vor.u32 %v5209_v35, %v3684_v32  ;;  %v4048_v32 = vld [vmem:[#allocation5 + $0x398] sm:$0xf]  ;;  %v5300_v35 = vld [vmem:[#allocation5 + $0x3b0] sm:$0xf0] }
 0x13e   :  { %2831 = vmatpush.bf16.msra.mxu0 %v4549_v5  ;;  %v4441_v5 = vor.u32 %v5398_v61, %v4440_v60  ;;  %v4328_v60 = vld [vmem:[#allocation5 + $0x5c8] sm:$0xf]  ;;  %v4049_v11 = vor.u32 %v5300_v35, %v4048_v32  ;;  %v4524_v35 = vld [vmem:[#allocation5 + $0x750] sm:$0xf] }
 0x13f   :  { %2819 = vmatpush.bf16.msrb.mxu1 %v4297_v13  ;;  %v3712_v13 = vld [vmem:[#allocation5 + $0xf8] sm:$0xf]  ;;  %v2562_v21 = vpop.f32.mrf.mxu1 }
 0x140   :  { %2844 = vmatpush.bf16.msra.mxu2 %v4773_v6  ;;  %v4188_v6 = vld [vmem:[#allocation5 + $0x4b0] sm:$0xf]  ;;  %v3713_v26 = vor.u32 %v5216_v14, %v3712_v13 }
 0x141   :  { %2807 = vmatpush.bf16.msra.mxu3 %v4045_v20  ;;  %v2590_v20 = vpop.f32.mrf.mxu0  ;;  %v4189_v22 = vor.u32 %v5335_v7, %v4188_v6  ;;  %v5251_v6 = vld [vmem:[#allocation5 + $0x228] sm:$0xf0]  ;;  %v4300_v13 = vld [vmem:[#allocation5 + $0x590] sm:$0xf] }
 0x142   :  { %2832 = vmatpush.bf16.msra.mxu0 %v4521_v29  ;;  %v5328_v29 = vld [vmem:[#allocation5 + $0x490] sm:$0xf0]  ;;  %v3824_v20 = vld [vmem:[#allocation5 + $0x1d8] sm:$0xf] }
 0x143   :  { %2820 = vmatpush.bf16.msrb.mxu1 %v4269_v38  ;;  %v5265_v38 = vld [vmem:[#allocation5 + $0x298] sm:$0xf0]  ;;  %v4161_v39 = vor.u32 %v5328_v29, %v4160_v28  ;;  %v4916_v28 = vld [vmem:[#allocation5 + $0xa60] sm:$0xf] }
 0x144   :  { %2845 = vmatpush.bf16.msra.mxu2 %v4745_v30  ;;  %2808 = vmatmul.bf16.vlgmr.msra.gmra.mxu3 %v5876_v53  ;;  %v4384_v30 = vld [vmem:[#allocation5 + $0x638] sm:$0xf]  ;;  %v3909_v43 = vor.u32 %v5265_v38, %v3908_v36  ;;  %v5517_v29 = vld [vmem:[#allocation5 + $0xa78] sm:$0xf0] }
 0x145   :  { %2859 = vmatpush.bf16.msrb.mxu3 %v4941_v25  ;;  %v2563_v25 = vadd.f32 %v2562_v21, %v5947_v17  ;;  %v4385_v3 = vor.u32 %v5384_v31, %v4384_v30  ;;  %v4132_v17 = vld [vmem:[#allocation5 + $0x440] sm:$0xf]  ;;  %v3601_v31 = vor.u32 %v5188_v16, %v3600_v15  ;;  %v4272_v36 = vld [vmem:[#allocation5 + $0x558] sm:$0xf]  ;;  %v5489_v15 = vld [vmem:[#allocation5 + $0x998] sm:$0xf0] }
 0x146   :  { %2833 = vmatpush.bf16.msra.mxu0 %v4493_v50  ;;  %2821 = vmatmul.bf16.vlgmr.msrb.gmra.mxu1 %v5884_v19  ;;  %v3880_v50 = vld [vmem:[#allocation5 + $0x248] sm:$0xf] }
 0x147   :  { %2865 = vmatpush.bf16.msra.mxu1 %v3797_v41  ;;  %v5321_v41 = vld [vmem:[#allocation5 + $0x458] sm:$0xf0]  ;;  %v2575_v48 = vpop.f32.mrf.mxu3 }
 0x148   :  { %2846 = vmatpush.bf16.msra.mxu2 %v4717_v51  ;;  %v5258_v51 = vld [vmem:[#allocation5 + $0x260] sm:$0xf0]  ;;  %v2576_v52 = vadd.f32 %v2575_v48, %v2563_v25  ;;  %v5461_v25 = vld [vmem:[#allocation5 + $0x8b8] sm:$0xf0] }
 0x149   :  { %2878 = vmatpush.bf16.msra.mxu3 %v4021_v42  ;;  %2834 = vmatmul.bf16.vlgmr.msra.gmra.mxu0 %v5892_v33  ;;  %v4356_v42 = vld [vmem:[#allocation5 + $0x600] sm:$0xf]  ;;  %v5956_v47 = vpop.f32.mrf.mxu0  ;;  %v3881_v62 = vor.u32 %v5258_v51, %v3880_v50  ;;  %v5510_v48 = vld [vmem:[#allocation5 + $0xa40] sm:$0xf0] }
 0x14a   :  { %2891 = vmatpush.bf16.msrb.mxu0 %v4245_v54  ;;  %v4133_v54 = vor.u32 %v5321_v41, %v4132_v17  ;;  %v4357_v56 = vor.u32 %v5377_v44, %v4356_v42  ;;  %v5961_v61 = vadd.f32 %v5949_v49, %v2576_v52  ;;  %v5363_v49 = vld [vmem:[#allocation5 + $0x5a8] sm:$0xf0]  ;;  %v5524_v17 = vld [vmem:[#allocation5 + $0xab0] sm:$0xf0]  ;;  %v4917_v42 = vor.u32 %v5517_v29, %v4916_v28  ;;  %v5454_v44 = vld [vmem:[#allocation5 + $0x880] sm:$0xf0] }
 0x14b   :  { %2866 = vmatpush.bf16.msra.mxu1 %v3769_v58  ;;  %2847 = vmatmul.bf16.vlgmr.msra.gmra.mxu2 %v5894_v37  ;;  %v4104_v58 = vld [vmem:[#allocation5 + $0x408] sm:$0xf]  ;;  %v4301_v30 = vor.u32 %v5363_v49, %v4300_v13  ;;  %v5532_v52 = vld [vmem:[#allocation8 + $0x38] sm:$0xff] }
 0x14c   :  { %2904 = vmatpush.bf16.msrb.mxu2 %v4469_v55  ;;  %v2564_v55 = vpop.f32.mrf.mxu1  ;;  %v5433_v13 = vld [vmem:[#allocation5 + $0x7d8] sm:$0xf0]  ;;  %v5538_v49 = vld [vmem:[#allocation8 + $0x68] sm:$0xff] }
 0x14d   :  { %2879 = vmatpush.bf16.msra.mxu3 %v3993_v59  ;;  %v5314_v59 = vld [vmem:[#allocation5 + $0x420] sm:$0xf0]  ;;  %v4889_v55 = vor.u32 %v5510_v48, %v4888_v46  ;;  %v5468_v46 = vld [vmem:[#allocation5 + $0x8f0] sm:$0xf0] }
 0x14e   :  { %2892 = vmatpush.bf16.msrb.mxu0 %v4217_v2  ;;  %v5963_v2 = vpop.f32.mrf.mxu2  ;;  %v4105_v7 = vor.u32 %v5314_v59, %v4104_v58  ;;  %v5540_v58 = vld [vmem:[#allocation8 + $0x78] sm:$0xff]  ;;  %v4860_v59 = vld [vmem:[#allocation5 + $0x9f0] sm:$0xf] }
 0x14f   :  { %2867 = vmatpush.bf16.msra.mxu1 %v3741_v8  ;;  %v4076_v8 = vld [vmem:[#allocation5 + $0x3d0] sm:$0xf] }
 0x150   :  { %2905 = vmatpush.bf16.msrb.mxu2 %v4441_v5  ;;  %v3852_v5 = vld [vmem:[#allocation5 + $0x210] sm:$0xf] }
 0x151   :  { %2880 = vmatpush.bf16.msra.mxu3 %v3965_v9  ;;  %v4329_v9 = vor.u32 %v5370_v63, %v4328_v60  ;;  %v3853_v14 = vor.u32 %v5251_v6, %v3852_v5  ;;  %v2616_v21 = vpop.f32.mrf.mxu0  ;;  %v5503_v60 = vld [vmem:[#allocation5 + $0xa08] sm:$0xf0]  ;;  %v5440_v5 = vld [vmem:[#allocation5 + $0x810] sm:$0xf0] }
 0x152   :  { %2893 = vmatpush.bf16.msrb.mxu0 %v4189_v22  ;;  %v5244_v22 = vld [vmem:[#allocation5 + $0x1f0] sm:$0xf0]  ;;  %v4861_v0 = vor.u32 %v5503_v60, %v4860_v59  ;;  %v4552_v21 = vld [vmem:[#allocation5 + $0x788] sm:$0xf]  ;;  %v5556_v59 = vld [vmem:[#allocation8 + $0xf8] sm:$0xff] }
 0x153   :  { %2868 = vmatpush.bf16.msra.mxu1 %v3713_v26  ;;  %v2577_v26 = vpop.f32.mrf.mxu3  ;;  %v3825_v38 = vor.u32 %v5244_v22, %v3824_v20  ;;  %v5539_v6 = vld [vmem:[#allocation8 + $0x70] sm:$0xff]  ;;  %v5534_v60 = vld [vmem:[#allocation8 + $0x48] sm:$0xff] }
 0x154   :  { %2906 = vmatpush.bf16.msrb.mxu2 %v4413_v24  ;;  %4951 = vmatmul.msk.bf16.vlgmr.msrb.gmra.mxu3 %vm2315_vm0, %v5888_v45  ;;  %v4692_v24 = vld [vmem:[#allocation5 + $0x8a0] sm:$0xf]  ;;  %v4776_v26 = vld [vmem:[#allocation5 + $0x948] sm:$0xf] }
 0x155   :  { %2881 = vmatpush.bf16.msra.mxu3 %v3937_v27  ;;  %v4077_v27 = vor.u32 %v5307_v12, %v4076_v8  ;;  %v5496_v8 = vld [vmem:[#allocation5 + $0x9d0] sm:$0xf0] }
 0x156   :  { %2894 = vmatpush.bf16.msrb.mxu0 %v4161_v39  ;;  %v4693_v39 = vor.u32 %v5461_v25, %v4692_v24  ;;  %v2603_v41 = vpop.f32.mrf.mxu2  ;;  %v5537_v24 = vld [vmem:[#allocation8 + $0x60] sm:$0xff] }
 0x157   :  { %2869 = vmatpush.bf16.msra.mxu1 %v3685_v40  ;;  %v4944_v40 = vld [vmem:[#allocation5 + $0xa98] sm:$0xf] }
 0x158   :  { %2907 = vmatpush.bf16.msrb.mxu2 %v4385_v3  ;;  %v5356_v3 = vld [vmem:[#allocation5 + $0x570] sm:$0xf0]  ;;  %v4945_v51 = vor.u32 %v5524_v17, %v4944_v40 }
 0x159   :  { %2882 = vmatpush.bf16.msra.mxu3 %v3909_v43  ;;  %v4664_v43 = vld [vmem:[#allocation5 + $0x868] sm:$0xf]  ;;  %v4273_v50 = vor.u32 %v5356_v3, %v4272_v36  ;;  %v5419_v36 = vld [vmem:[#allocation5 + $0x768] sm:$0xf0]  ;;  %v5527_v40 = vld [vmem:[#allocation8 + $0x10] sm:$0xff] }
 0x15a   :  { %2895 = vmatpush.bf16.msrb.mxu0 %v4133_v54  ;;  %v4665_v54 = vor.u32 %v5454_v44, %v4664_v43  ;;  %v5475_v3 = vld [vmem:[#allocation5 + $0x928] sm:$0xf0]  ;;  %v4525_v17 = vor.u32 %v5419_v36, %v4524_v35  ;;  %v5412_v43 = vld [vmem:[#allocation5 + $0x730] sm:$0xf0] }
 0x15b   :  { %2870 = vmatpush.bf16.msra.mxu1 %v3657_v57  ;;  %v5447_v57 = vld [vmem:[#allocation5 + $0x848] sm:$0xf0]  ;;  %v5535_v44 = vld [vmem:[#allocation8 + $0x50] sm:$0xff] }
 0x15c   :  { %2908 = vmatpush.bf16.msrb.mxu2 %v4357_v56  ;;  %v4636_v56 = vld [vmem:[#allocation5 + $0x830] sm:$0xf] }
 0x15d   :  { %2883 = vmatpush.bf16.msra.mxu3 %v3881_v62  ;;  %v5531_v62 = vld [vmem:[#allocation8 + $0x30] sm:$0xff]  ;;  %v4637_v63 = vor.u32 %v5447_v57, %v4636_v56  ;;  %v5981_v56 = vld [vmem:[#allocation7] sm:$0x7f] }
 0x15e   :  { %2896 = vmatpush.bf16.msrb.mxu0 %v4105_v7  ;;  %v4832_v7 = vld [vmem:[#allocation5 + $0x9b8] sm:$0xf] }
 0x15f   :  { %2871 = vmatpush.bf16.msra.mxu1 %v3629_v10  ;;  %v4609_v10 = vor.u32 %v5440_v5, %v4608_v1  ;;  %v4833_v12 = vor.u32 %v5496_v8, %v4832_v7  ;;  %v5547_v1 = vld [vmem:[#allocation8 + $0xb0] sm:$0xff]  ;;  %v5564_v5 = vld [vmem:[#allocation8 + $0x138] sm:$0xff]  ;;  %v5533_v7 = vld [vmem:[#allocation8 + $0x40] sm:$0xff]  ;;  %v2957_v8 = vmax.f32 %v5940_v34, 0.0 }
 0x160   :  { %2909 = vmatpush.bf16.msrb.mxu2 %v4329_v9  ;;  %v5968_v9 = vpop.f32.mrf.mxu1 }
 0x161   :  { %2884 = vmatpush.bf16.msra.mxu3 %v3853_v14  ;;  %v4804_v14 = vld [vmem:[#allocation5 + $0x980] sm:$0xf] }
 0x162   :  { %2897 = vmatpush.bf16.msrb.mxu0 %v4077_v27  ;;  %v4805_v20 = vor.u32 %v5489_v15, %v4804_v14  ;;  %v5482_v27 = vld [vmem:[#allocation5 + $0x960] sm:$0xf0]  ;;  %v5544_v15 = vld [vmem:[#allocation8 + $0x98] sm:$0xff] }
 0x163   :  { %2872 = vmatpush.bf16.msra.mxu1 %v3601_v31  ;;  %v4777_v32 = vor.u32 %v5482_v27, %v4776_v26  ;;  %v5560_v27 = vld [vmem:[#allocation8 + $0x118] sm:$0xff] }
 0x164   :  { %2910 = vmatpush.bf16.msrb.mxu2 %v4301_v30  ;;  %v5528_v30 = vld [vmem:[#allocation8 + $0x18] sm:$0xff] }
 0x165   :  { %2885 = vmatpush.bf16.msra.mxu3 %v3825_v38  ;;  %v5536_v38 = vld [vmem:[#allocation8 + $0x58] sm:$0xff] }
 0x166   :  { %2898 = vmatpush.bf16.msrb.mxu0 %v4049_v11  ;;  %2873 = vmatmul.bf16.vlgmr.msra.gmra.mxu1 %v5879_v4  ;;  %v5530_v4 = vld [vmem:[#allocation8 + $0x28] sm:$0xff]  ;;  %v5973_v25 = vpop.f32.mrf.mxu0  ;;  %v4720_v11 = vld [vmem:[#allocation5 + $0x8d8] sm:$0xf] }
 0x167   :  { %2917 = vmatpush.bf16.msrb.mxu1 %v4693_v39  ;;  %v5971_v22 = vpop.f32.mrf.mxu3  ;;  %v4748_v39 = vld [vmem:[#allocation5 + $0x910] sm:$0xf]  ;;  %v4721_v57 = vor.u32 %v5468_v46, %v4720_v11  ;;  %v5557_v46 = vld [vmem:[#allocation8 + $0x100] sm:$0xff] }
 0x168   :  { %2911 = vmatpush.bf16.msrb.mxu2 %v4273_v50  ;;  %2886 = vmatmul.bf16.vlgmr.msra.gmra.mxu3 %v5882_v18  ;;  %v5529_v18 = vld [vmem:[#allocation8 + $0x20] sm:$0xff]  ;;  %v2629_v28 = vpop.f32.mrf.mxu1  ;;  %v4749_v41 = vor.u32 %v5475_v3, %v4748_v39  ;;  %v541_v39 = vperm.slane %v5981_v56, 4 }
 0x169   :  { %2930 = vmatpush.bf16.msrb.mxu3 %v4917_v42  ;;  %2899 = vmatmul.bf16.vlgmr.msrb.gmra.mxu0 %v5876_v53  ;;  %v4580_v53 = vld [vmem:[#allocation5 + $0x7c0] sm:$0xf]  ;;  %v4496_v42 = vld [vmem:[#allocation5 + $0x718] sm:$0xf] }
 0x16a   :  { %2950 = vmatpush.bf16.msra.mxu0 %v4945_v51  ;;  %v4581_v16 = vor.u32 %v5433_v13, %v4580_v53  ;;  %v5975_v29 = vpop.f32.mrf.mxu2  ;;  %v5563_v53 = vld [vmem:[#allocation8 + $0x130] sm:$0xff]  ;;  %v2964_v13 = vpack.c.bf16 %v2957_v8, %v2957_v8  ;;  %v5541_v3 = vld [vmem:[#allocation8 + $0x80] sm:$0xff] }
 0x16b   :  { %2918 = vmatpush.bf16.msrb.mxu1 %v4665_v54  ;;  %2912 = vmatmul.bf16.vlgmr.msrb.gmra.mxu2 %v5884_v19  ;;  %v5426_v19 = vld [vmem:[#allocation5 + $0x7a0] sm:$0xf0]  ;;  %v4497_v54 = vor.u32 %v5412_v43, %v4496_v42  ;;  %v5558_v42 = vld [vmem:[#allocation8 + $0x108] sm:$0xff] }
 0x16c   :  { %3369 = vmatpush.bf16.msra.mxu2 %v5532_v52  ;;  %v4553_v31 = vor.u32 %v5426_v19, %v4552_v21  ;;  %v5526_v52 = vld [vmem:[#allocation8 + $0x8] sm:$0xff]  ;;  %v5543_v19 = vld [vmem:[#allocation8 + $0x90] sm:$0xff] }
 0x16d   :  { %2931 = vmatpush.bf16.msrb.mxu3 %v4889_v55 }
 0x16e   :  { %3382 = vmatpush.bf16.msrb.mxu0 %v5540_v58  ;;  %v2668_v50 = vpop.f32.mrf.mxu0  ;;  %v5548_v58 = vld [vmem:[#allocation8 + $0xb8] sm:$0xff] }
 0x16f   :  { %2919 = vmatpush.bf16.msrb.mxu1 %v4637_v63  ;;  %v2642_v48 = vpop.f32.mrf.mxu3  ;;  %v2956_v63 = vmax.f32 %v5926_v23, 0.0 }
 0x170   :  { %3370 = vmatpush.bf16.msra.mxu2 %v5531_v62  ;;  %v5979_v51 = vpop.f32.mrf.mxu1  ;;  %v5525_v62 = vld [vmem:[#allocation8] sm:$0xff] }
 0x171   :  { %2932 = vmatpush.bf16.msrb.mxu3 %v4861_v0 }
 0x172   :  { %3383 = vmatpush.bf16.msrb.mxu0 %v5539_v6  ;;  %v2655_v55 = vpop.f32.mrf.mxu2  ;;  %v5555_v6 = vld [vmem:[#allocation8 + $0xf0] sm:$0xff] }
 0x173   :  { %2920 = vmatpush.bf16.msrb.mxu1 %v4609_v10  ;;  %v2963_v10 = vpack.c.bf16 %v2956_v63, %v2956_v63  ;;  %v5568_v63 = vld [vmem:[#allocation8 + $0x158] sm:$0xff] }
 0x174   :  { %3371 = vmatpush.bf16.msra.mxu2 %v5530_v4 }
 0x175   :  { %2933 = vmatpush.bf16.msrb.mxu3 %v4833_v12  ;;  %v5554_v12 = vld [vmem:[#allocation8 + $0xe8] sm:$0xff] }
 0x176   :  { %3384 = vmatpush.bf16.msrb.mxu0 %v5538_v49  ;;  %v5562_v49 = vld [vmem:[#allocation8 + $0x128] sm:$0xff] }
 0x177   :  { %2921 = vmatpush.bf16.msrb.mxu1 %v4581_v16  ;;  %v5561_v16 = vld [vmem:[#allocation8 + $0x120] sm:$0xff] }
 0x178   :  { %3372 = vmatpush.bf16.msra.mxu2 %v5529_v18  ;;  %v2681_v4 = vpop.f32.mrf.mxu1  ;;  %v5552_v18 = vld [vmem:[#allocation8 + $0xd8] sm:$0xff] }
 0x179   :  { %2934 = vmatpush.bf16.msrb.mxu3 %v4805_v20  ;;  %4952 = vmatmul.msk.bf16.vlgmr.msra.gmra.mxu0 %vm2315_vm0, %v5888_v45  ;;  %v540_v45 = vperm.slane %v5981_v56, 3 }
 0x17a   :  { %3385 = vmatpush.bf16.msrb.mxu0 %v5537_v24  ;;  %v5551_v24 = vld [vmem:[#allocation8 + $0xd0] sm:$0xff] }
 0x17b   :  { %2922 = vmatpush.bf16.msrb.mxu1 %v4553_v31  ;;  %v2602_v0 = vadd.f32 %v5963_v2, %v540_v45  ;;  %v5546_v2 = vld [vmem:[#allocation8 + $0xa8] sm:$0xff] }
 0x17c   :  { %3373 = vmatpush.bf16.msra.mxu2 %v5528_v30  ;;  %v5542_v30 = vld [vmem:[#allocation8 + $0x88] sm:$0xff] }
 0x17d   :  { %2935 = vmatpush.bf16.msrb.mxu3 %v4777_v32  ;;  %v2615_v23 = vadd.f32 %v5956_v47, %v2602_v0  ;;  %v5550_v31 = vld [vmem:[#allocation8 + $0xc8] sm:$0xff]  ;;  %v5559_v32 = vld [vmem:[#allocation8 + $0x110] sm:$0xff] }
 0x17e   :  { %3386 = vmatpush.bf16.msrb.mxu0 %v5536_v38 }
 0x17f   :  { %2923 = vmatpush.bf16.msrb.mxu1 %v4525_v17  ;;  %v2628_v34 = vadd.f32 %v5968_v9, %v2615_v23  ;;  %v2958_v17 = vmax.f32 %v5961_v61, 0.0  ;;  %v5566_v23 = vld [vmem:[#allocation8 + $0x148] sm:$0xff] }
 0x180   :  { %3374 = vmatpush.bf16.msra.mxu2 %v5527_v40  ;;  %v5571_v40 = vld [vmem:[#allocation8 + $0x170] sm:$0xff] }
 0x181   :  { %2936 = vmatpush.bf16.msrb.mxu3 %v4749_v41  ;;  %v2641_v47 = vadd.f32 %v5971_v22, %v2628_v34  ;;  %v2965_v11 = vpack.c.bf16 %v2958_v17, %v2958_v17 }
 0x182   :  { %3387 = vmatpush.bf16.msrb.mxu0 %v5535_v44 }
 0x183   :  { %2924 = vmatpush.bf16.msrb.mxu1 %v4497_v54  ;;  %v2705_v14 = vpop.f32.mrf.mxu1  ;;  %v2654_v9 = vadd.f32 %v5975_v29, %v2641_v47  ;;  %v5572_v29 = vld [vmem:[#allocation8 + $0x178] sm:$0xff] }
 0x184   :  { %3375 = vmatpush.bf16.msra.mxu2 %v5526_v52  ;;  %v5570_v52 = vld [vmem:[#allocation8 + $0x168] sm:$0xff] }
 0x185   :  { %2937 = vmatpush.bf16.msrb.mxu3 %v4721_v57  ;;  %v2667_v22 = vadd.f32 %v5973_v25, %v2654_v9  ;;  %v5549_v25 = vld [vmem:[#allocation8 + $0xc0] sm:$0xff] }
 0x186   :  { %3388 = vmatpush.bf16.msrb.mxu0 %v5534_v60  ;;  %2925 = vmatmul.bf16.vlgmr.msrb.gmra.mxu1 %v5892_v33  ;;  %v5545_v33 = vld [vmem:[#allocation8 + $0xa0] sm:$0xff]  ;;  %v2731_v20 = vpop.f32.mrf.mxu0 }
 0x187   :  { %3395 = vmatpush.bf16.msra.mxu1 %v5548_v58  ;;  %v2692_v21 = vpop.f32.mrf.mxu3  ;;  %v2680_v35 = vadd.f32 %v5979_v51, %v2667_v22  ;;  %v5569_v58 = vld [vmem:[#allocation8 + $0x160] sm:$0xff] }
 0x188   :  { %2938 = vmatmul.bf16.vlgmr.msrb.gmra.mxu3 %v5894_v37  ;;  %3376 = vmatpush.bf16.msra.mxu2 %v5525_v62  ;;  %v5553_v37 = vld [vmem:[#allocation8 + $0xe0] sm:$0xff]  ;;  %v2693_v44 = vadd.f32 %v2692_v21, %v541_v39  ;;  %v543_v39 = vperm.slane %v5981_v56, 6 }
 0x189   :  { %3408 = vmatpush.bf16.msra.mxu3 %v5556_v59  ;;  %v2959_v43 = vmax.f32 %v2680_v35, 0.0  ;;  %v5573_v22 = vld [vmem:[#allocation8 + $0x180] sm:$0xff] }
 0x18a   :  { %3389 = vmatpush.bf16.msrb.mxu0 %v5533_v7  ;;  %v2718_v26 = vpop.f32.mrf.mxu2  ;;  %v2706_v50 = vadd.f32 %v2705_v14, %v2693_v44 }
 0x18b   :  { %3396 = vmatpush.bf16.msra.mxu1 %v5547_v1  ;;  %3377 = vmatmul.bf16.vlgmr.msra.gmra.mxu2 %v2963_v10  ;;  %v2707_v28 = vpop.f32.mrf.mxu1  ;;  %v2966_v48 = vpack.c.bf16 %v2959_v43, %v2959_v43  ;;  %v5567_v1 = vld [vmem:[#allocation8 + $0x150] sm:$0xff] }
 0x18c   :  { %3421 = vmatpush.bf16.msrb.mxu2 %v5564_v5  ;;  %v2719_v61 = vadd.f32 %v2718_v26, %v2706_v50 }
 0x18d   :  { %3409 = vmatpush.bf16.msra.mxu3 %v5555_v6  ;;  %3390 = vmatmul.bf16.vlgmr.msrb.gmra.mxu0 %v2964_v13 }
 0x18e   :  { %v2733_v36 = vpop.f32.mrf.mxu0  ;;  %3434 = vmatpush.bf16.msra.mxu0 %v5572_v29  ;;  %v2732_v54 = vadd.f32 %v2731_v20, %v2719_v61 }
 0x18f   :  { %3397 = vmatpush.bf16.msra.mxu1 %v5546_v2  ;;  %v2694_v38 = vpop.f32.mrf.mxu3 }
 0x190   :  { %3422 = vmatpush.bf16.msrb.mxu2 %v5563_v53  ;;  %v542_v53 = vperm.slane %v5981_v56, 5 }
 0x191   :  { %3410 = vmatpush.bf16.msra.mxu3 %v5554_v12  ;;  %v5565_v12 = vld [vmem:[#allocation8 + $0x140] sm:$0xff] }
 0x192   :  { %v2720_v41 = vpop.f32.mrf.mxu2  ;;  %3435 = vmatpush.bf16.msra.mxu0 %v5571_v40 }
 0x193   :  { %3398 = vmatpush.bf16.msra.mxu1 %v5545_v33 }
 0x194   :  { %3423 = vmatpush.bf16.msrb.mxu2 %v5562_v49 }
 0x195   :  { %3411 = vmatpush.bf16.msra.mxu3 %v5553_v37 }
 0x196   :  { %3436 = vmatpush.bf16.msra.mxu0 %v5570_v52 }
 0x197   :  { %3399 = vmatpush.bf16.msra.mxu1 %v5544_v15 }
 0x198   :  { %3424 = vmatpush.bf16.msrb.mxu2 %v5561_v16 }
 0x199   :  { %3412 = vmatpush.bf16.msra.mxu3 %v5552_v18 }
 0x19a   :  { %v2770_v51 = vpop.f32.mrf.mxu2  ;;  %3437 = vmatpush.bf16.msra.mxu0 %v5569_v58 }
 0x19b   :  { %3400 = vmatpush.bf16.msra.mxu1 %v5543_v19 }
 0x19c   :  { %3425 = vmatpush.bf16.msrb.mxu2 %v5560_v27 }
 0x19d   :  { %3413 = vmatpush.bf16.msra.mxu3 %v5551_v24 }
 0x19e   :  { %3438 = vmatpush.bf16.msra.mxu0 %v5568_v63 }
 0x19f   :  { %3401 = vmatpush.bf16.msra.mxu1 %v5542_v30 }
 0x1a0   :  { %3426 = vmatpush.bf16.msrb.mxu2 %v5559_v32 }
 0x1a1   :  { %3414 = vmatpush.bf16.msra.mxu3 %v5550_v31 }
 0x1a2   :  { %v2772_v55 = vpop.f32.mrf.mxu2  ;;  %3439 = vmatpush.bf16.msra.mxu0 %v5567_v1 }
 0x1a3   :  { %3402 = vmatpush.bf16.msra.mxu1 %v5541_v3  ;;  %v2757_v57 = vpop.f32.mrf.mxu1 }
 0x1a4   :  { %3427 = vmatpush.bf16.msrb.mxu2 %v5558_v42 }
 0x1a5   :  { %3415 = vmatpush.bf16.msra.mxu3 %v5549_v25 }
 0x1a6   :  { %3403 = vmatmul.bf16.vlgmr.msra.gmra.mxu1 %v2965_v11  ;;  %v2783_v60 = vpop.f32.mrf.mxu0  ;;  %3440 = vmatpush.bf16.msra.mxu0 %v5566_v23  ;;  %v5581_v23 = vld [vmem:[#allocation11 + $0x38] sm:$0xff] }
 0x1a7   :  { %v2744_v45 = vpop.f32.mrf.mxu3  ;;  %v2784_v13 = vadd.f32 %v2783_v60, %v542_v53  ;;  %3454 = vmatpush.bf16.msrb.mxu1 %v5573_v22  ;;  %v5578_v53 = vld [vmem:[#allocation11 + $0x20] sm:$0xff] }
 0x1a8   :  { %3416 = vmatmul.bf16.vlgmr.msra.gmra.mxu3 %v2966_v48  ;;  %3428 = vmatpush.bf16.msrb.mxu2 %v5557_v46  ;;  %v2745_v59 = vadd.f32 %v2744_v45, %v2732_v54 }
 0x1a9   :  { %3530 = vmatpush.bf16.msrb.mxu3 %v5581_v23 }
 0x1aa   :  { %v2758_v62 = vadd.f32 %v2757_v57, %v2745_v59  ;;  %3441 = vmatpush.bf16.msra.mxu0 %v5565_v12  ;;  %v5579_v12 = vld [vmem:[#allocation11 + $0x28] sm:$0xff] }
 0x1ab   :  { %v2759_v8 = vpop.f32.mrf.mxu1 }
 0x1ac   :  { %v2771_v0 = vadd.f32 %v2770_v51, %v2758_v62  ;;  %v5594_v51 = vld [vmem:[#allocation10] ss:$0 sm:$0xff] }
 0x1ae   :  { %v2960_v5 = vmax.f32 %v2771_v0, 0.0  ;;  %v2796_v6 = vpop.f32.mrf.mxu2  ;;  %v2785_v10 = vpop.f32.mrf.mxu0 }
 0x1af   :  { %v2746_v7 = vpop.f32.mrf.mxu3  ;;  %v2797_v34 = vadd.f32 %v2796_v6, %v2784_v13  ;;  %v5577_v13 = vld [vmem:[#allocation11 + $0x18] sm:$0xff] }
 0x1b0   :  { %v2967_v4 = vpack.c.bf16 %v2960_v5, %v2960_v5 }
 0x1b2   :  { %3429 = vmatmul.bf16.vlgmr.msrb.gmra.mxu2 %v2967_v4 }
 0x1b6   :  { %v2798_v2 = vpop.f32.mrf.mxu2 }
 0x1b7   :  { %v5580_v2 = vld [vmem:[#allocation11 + $0x30] sm:$0xff] }
 0x1b8   :  { %3531 = vmatpush.bf16.msrb.mxu3 %v5580_v2 }
 0x1bc   :  { %3532 = vmatpush.bf16.msrb.mxu3 %v5579_v12 }
 0x1c0   :  { %3533 = vmatpush.bf16.msrb.mxu3 %v5578_v53 }
 0x1c3   :  { %v2822_v37 = vpop.f32.mrf.mxu1 }
 0x1c4   :  { %3534 = vmatpush.bf16.msrb.mxu3 %v5577_v13 }
 0x1c6   :  { %v2835_v49 = vpop.f32.mrf.mxu0 }
 0x1c7   :  { %v2809_v33 = vpop.f32.mrf.mxu3 }
 0x1c8   :  { %v2810_v14 = vadd.f32 %v2809_v33, %v2797_v34  ;;  %v5576_v34 = vld [vmem:[#allocation11 + $0x10] sm:$0xff] }
 0x1c9   :  { %3535 = vmatpush.bf16.msrb.mxu3 %v5576_v34 }
 0x1ca   :  { %v2823_v15 = vadd.f32 %v2822_v37, %v2810_v14  ;;  %v5574_v14 = vld [vmem:[#allocation11] sm:$0xff] }
 0x1cb   :  { %v2824_v16 = vpop.f32.mrf.mxu1 }
 0x1cc   :  { %v2836_v21 = vadd.f32 %v2835_v49, %v2823_v15  ;;  %v5575_v49 = vld [vmem:[#allocation11 + $0x8] sm:$0xff] }
 0x1cd   :  { %3536 = vmatpush.bf16.msrb.mxu3 %v5575_v49 }
 0x1ce   :  { %v2848_v47 = vpop.f32.mrf.mxu2  ;;  %v2837_v20 = vpop.f32.mrf.mxu0 }
 0x1cf   :  { %v2811_v18 = vpop.f32.mrf.mxu3  ;;  %v2849_v19 = vadd.f32 %v2848_v47, %v2836_v21 }
 0x1d1   :  { %3537 = vmatpush.bf16.msrb.mxu3 %v5574_v14 }
 0x1d6   :  { %v2850_v9 = vpop.f32.mrf.mxu2 }
 0x1d7   :  { %v2861_v24 = vpop.f32.mrf.mxu3  ;;  %v5595_v9 = vld [vmem:[#allocation13] ss:$0 sm:$0xff] }
 0x1d8   :  { %v2862_v26 = vadd.f32 %v2861_v24, %v2849_v19 }
 0x1da   :  { %v2961_v27 = vmax.f32 %v2862_v26, 0.0 }
 0x1dc   :  { %v2968_v28 = vpack.c.bf16 %v2961_v27, %v2961_v27 }
 0x1de   :  { %3442 = vmatmul.bf16.vlgmr.msra.gmra.mxu0 %v2968_v28 }
 0x1df   :  { %v2863_v30 = vpop.f32.mrf.mxu3 }
 0x1e3   :  { %v2874_v31 = vpop.f32.mrf.mxu1 }
 0x1e4   :  { %v2875_v25 = vadd.f32 %v2874_v31, %v543_v39 }
 0x1e6   :  { %v2900_v32 = vpop.f32.mrf.mxu0 }
 0x1eb   :  { %v2876_v35 = vpop.f32.mrf.mxu1  ;;  %v2887_v36 = vpop.f32.mrf.mxu3 }
 0x1ec   :  { %v2888_v41 = vadd.f32 %v2887_v36, %v2875_v25 }
 0x1ee   :  { %v2902_v29 = vpop.f32.mrf.mxu0  ;;  %v2913_v38 = vpop.f32.mrf.mxu2  ;;  %v2901_v43 = vadd.f32 %v2900_v32, %v2888_v41 }
 0x1f0   :  { %v2914_v11 = vadd.f32 %v2913_v38, %v2901_v43 }
 0x1f3   :  { %v2889_v3 = vpop.f32.mrf.mxu3 }
 0x1f6   :  { %v2952_v40 = vpop.f32.mrf.mxu0  ;;  %v2915_v17 = vpop.f32.mrf.mxu2 }
 0x1fe   :  { %v2954_v42 = vpop.f32.mrf.mxu0 }
 0x203   :  { %v2926_v44 = vpop.f32.mrf.mxu1 }
 0x204   :  { %v2927_v46 = vadd.f32 %v2926_v44, %v2914_v11 }
 0x20a   :  { %v3391_v48 = vpop.f32.mrf.mxu0 }
 0x20b   :  { %v2939_v50 = vpop.f32.mrf.mxu3  ;;  %v2928_v52 = vpop.f32.mrf.mxu1 }
 0x20c   :  { %v2940_v61 = vadd.f32 %v2939_v50, %v2927_v46 }
 0x20e   :  { %v2953_v54 = vadd.f32 %v2952_v40, %v2940_v61  ;;  %v3378_v55 = vpop.f32.mrf.mxu2 }
 0x20f   :  { %v3379_v45 = vadd.f32 %v5594_v51, %v3378_v55 }
 0x210   :  { %v2962_v57 = vmax.f32 %v2953_v54, 0.0 }
 0x211   :  { %v3392_v56 = vadd.f32 %v3391_v48, %v3379_v45 }
 0x212   :  { %v2969_v58 = vpack.c.bf16 %v2962_v57, %v2962_v57  ;;  %v3393_v59 = vpop.f32.mrf.mxu0 }
 0x213   :  { %v2941_v60 = vpop.f32.mrf.mxu3 }
 0x214   :  { %5149 = vmatmul.msk.bf16.vlgmr.msrb.gmra.mxu1 %vm2315_vm0, %v2969_v58 }
 0x216   :  { %v3380_v62 = vpop.f32.mrf.mxu2 }
 0x223   :  { %v3404_v63 = vpop.f32.mrf.mxu1 }
 0x224   :  { %v3405_v0 = vadd.f32 %v3404_v63, %v3392_v56 }
 0x22b   :  { %v3417_v1 = vpop.f32.mrf.mxu3  ;;  %v3406_v6 = vpop.f32.mrf.mxu1 }
 0x22c   :  { %v3418_v5 = vadd.f32 %v3417_v1, %v3405_v0 }
 0x233   :  { %v3419_v7 = vpop.f32.mrf.mxu3 }
 0x235   :  { %v3430_v8 = vpop.f32.mrf.mxu2 }
 0x236   :  { %v3431_v4 = vadd.f32 %v3430_v8, %v3418_v5 }
 0x23d   :  { %v3432_v10 = vpop.f32.mrf.mxu2 }
 0x25b   :  { %v3443_v33 = vpop.f32.mrf.mxu0 }
 0x25c   :  { %v3444_v47 = vadd.f32 %v3443_v33, %v3431_v4 }
 0x263   :  { %v3445_v37 = vpop.f32.mrf.mxu0 }
 0x291   :  { %v3456_v15 = vpop.f32.mrf.mxu1 }
 0x292   :  { %v3457_v18 = vadd.f32 %v3456_v15, %v3444_v47 }
 0x294   :  { %v3460_v16 = vmax.f32 %v3457_v18, 0.0 }
 0x296   :  { %v3461_v20 = vpack.c.bf16 %v3460_v16, %v3460_v16 }
 0x298   :  { %3538 = vmatmul.bf16.vlgmr.msrb.gmra.mxu3 %v3461_v20 }
 0x299   :  { %v3458_v21 = vpop.f32.mrf.mxu1 }
 0x31b   :  { %v3539_v19 = vpop.f32.mrf.mxu3 }
 0x31c   :  { %v3540_v24 = vadd.f32 %v5595_v9, %v3539_v19 }
 0x31e   :  { %3543 = vmax.xlane.f32.xlu0 %v3540_v24 }
 0x323   :  { %v3541_v26 = vpop.f32.mrf.mxu3 }
 0x391   :  { %v3544_v27 = vpop.xlane.xlu0 %3543 }
 0x392   :  { %v3545_v28 = vsub.f32 %v3540_v24, %v3544_v27 }
 0x394   :  { %v3546_v22 = vmul.f32 1.442695, %v3545_v28 }
 0x396   :  { %5596 = vpow2.f32 %v3546_v22 }
 0x39c   :  { %v5597_v30 = vpop.eup %5596 }
 0x39d   :  { %3548 = vadd.xlane.f32.xlu0 %v5597_v30 }
 0x410   :  { %v3549_v31 = vpop.xlane.xlu0 %3548 }
 0x411   :  { %5598 = vrcp.f32 %v3549_v31 }
 0x417   :  { %v5599_v32 = vpop.eup %5598 }
 0x418   :  { %v3551_v35 = vmul.f32 %v5599_v32, %v5597_v30 }
 0x41a   :  { %v3552_v36 = vpack.c.bf16 %v3551_v35, %v3551_v35 }
 0x41c   :  { %3553 = vst [vmem:[#allocation14] sm:$0xf] %v3552_v36 }
 0x41d   :  { %3564 = dma.vmem_to_hbm [thread:$0]  %s3560_s6, 64, %s3562_s14, [#allocation4]  }
 0x41e   :  { %5801 = dma.done.wait [#allocation4], 64  }
 0x41f   :  { %5802 = vsyncadd [#allocation4], 4294967232 }
 0x420   :  { %3569 = vsyncpa [#allocation3], 1 }
 0x421   :  { %3570 = vsyncpa [#allocation6], 1 }
 0x422   :  { %3571 = vsyncpa [#allocation9], 1 }
 0x423   :  { %3572 = vsyncpa [#allocation12], 1 }
 0x424   :  { %3573 = vsyncpa [#allocation4], 1 }

</bundles_post_ra>
